<compile_context>
chip_gen: v5e
topology: v5e:2x2
jax: 0.10.0
libtpu: 0.0.40
codegen_flags: <defaults>
</compile_context>

<pallas_src>
import functools
import math

import jax
import jax.numpy as jnp
from jax.experimental import pallas as pl
from jax.experimental.pallas import tpu as pltpu


def _round_up(a, b):
    return (a + b - 1) // b * b


def _cdiv(a, b):
    return (a + b - 1) // b


def _gelu(h, exact):
    if exact:
        # torch.nn.GELU() default (erf based) -- long VALU polynomial.
        return 0.5 * h * (1.0 + jax.lax.erf(h * (1.0 / math.sqrt(2.0))))
    # tanh approximation -- transcendental goes to the EUP slot.
    return jax.nn.gelu(h, approximate=True)


def _layer_norm(x_f32, g, b):
    mean = jnp.mean(x_f32, axis=-1, keepdims=True)
    centered = x_f32 - mean
    var = jnp.mean(centered * centered, axis=-1, keepdims=True)
    xn = centered * jax.lax.rsqrt(var + 1e-6)
    return xn * g + b


# --------------------------------------------------------------------------
# Primary kernel: weights fully VMEM-resident, grid = (row tiles,).
# --------------------------------------------------------------------------
def _ff_kernel_resident(x_ref, g_ref, bta_ref, w1_ref, b1_ref, w2_ref, b2_ref,
                        o_ref, *, exact_gelu):
    xn = _layer_norm(x_ref[...].astype(jnp.float32), g_ref[...], bta_ref[...])
    # Linear(dim -> hidden): bf16 operands, f32 accumulation on the MXU.
    h = jnp.dot(xn.astype(jnp.bfloat16), w1_ref[...],
                preferred_element_type=jnp.float32) + b1_ref[...]
    h = _gelu(h, exact_gelu)
    # Dropout(p=0.0) is identity (eval semantics).
    out = jnp.dot(h.astype(jnp.bfloat16), w2_ref[...],
                  preferred_element_type=jnp.float32) + b2_ref[...]
    o_ref[...] = out.astype(o_ref.dtype)


# --------------------------------------------------------------------------
# Fallback kernel: hidden-dim streamed, accumulate directly into the f32
# output block (out BlockSpec is constant over the h axis).
# --------------------------------------------------------------------------
def _ff_kernel_stream(x_ref, g_ref, bta_ref, w1_ref, b1_ref, w2_ref, b2_ref,
                      o_ref, xn_ref, *, exact_gelu):
    h_idx = pl.program_id(1)
    n_h = pl.num_programs(1)

    @pl.when(h_idx == 0)
    def _():
        xn = _layer_norm(x_ref[...].astype(jnp.float32), g_ref[...], bta_ref[...])
        xn_ref[...] = xn.astype(xn_ref.dtype)   # cache LN output (bf16) per row tile
        o_ref[...] = jnp.zeros_like(o_ref)

    h = jnp.dot(xn_ref[...], w1_ref[...],
                preferred_element_type=jnp.float32) + b1_ref[...]
    h = _gelu(h, exact_gelu)
    o_ref[...] += jnp.dot(h.astype(jnp.bfloat16), w2_ref[...],
                          preferred_element_type=jnp.float32)

    @pl.when(h_idx == n_h - 1)
    def _():
        o_ref[...] += b2_ref[...]


def _pick_th(H, th_req):
    """Largest divisor of H that is a multiple of 256 (128 fallback) and <= th_req."""
    for gran in (256, 128):
        best = 0
        d = gran
        while d <= min(H, max(th_req, gran)):
            if H % d == 0:
                best = d
            d += gran
        if best:
            return best
    return H


def feed_forward(x, params, *, tm=256, th=512, exact_gelu=False):
    """x: (B, N, C).  params: dict of LN/Linear weights (see init_params)."""
    B, N, C = x.shape
    H = params["w1"].shape[1]
    rows = B * N
    x_item = x.dtype.itemsize

    # ---- row tiling ---------------------------------------------------------
    tm = _round_up(max(8, min(tm, rows)), 8)
    if rows >= 256 and _cdiv(rows, tm) < 2:
        # Ensure >= 2 row tiles so the "parallel" axis spans both v7x TCs.
        tm = _round_up(_cdiv(rows, 2), 8)
    rows_p = _round_up(rows, tm)
    n_row_tiles = rows_p // tm

    x2d = x.reshape(rows, C)
    if rows_p != rows:
        # Zero pad rows are numerically safe (LN eps keeps rsqrt finite); sliced off below.
        x2d = jnp.pad(x2d, ((0, rows_p - rows), (0, 0)))

    gamma = params["gamma"].reshape(1, C).astype(jnp.float32)
    beta = params["beta"].reshape(1, C).astype(jnp.float32)
    w1 = params["w1"].astype(jnp.bfloat16)   # bf16 operands, f32 accumulation
    w2 = params["w2"].astype(jnp.bfloat16)
    b1 = params["b1"].reshape(1, H).astype(jnp.float32)
    b2 = params["b2"].reshape(1, C).astype(jnp.float32)

    weight_bytes = 2 * C * H * 2             # bf16 w1 + w2
    use_resident = weight_bytes <= 8 * (1 << 20)

    flops = 4 * rows_p * C * H               # two matmuls, 2*M*K*N each
    transcendentals = rows_p * H             # one gelu transcendental per hidden elem

    if use_resident:
        kernel = functools.partial(_ff_kernel_resident, exact_gelu=exact_gelu)
        grid = (n_row_tiles,)
        in_specs = [
            pl.BlockSpec((tm, C), lambda i: (i, 0)),   # x rows
            pl.BlockSpec((1, C), lambda i: (0, 0)),    # ln gamma
            pl.BlockSpec((1, C), lambda i: (0, 0)),    # ln beta
            pl.BlockSpec((C, H), lambda i: (0, 0)),    # w1 (fully resident)
            pl.BlockSpec((1, H), lambda i: (0, 0)),    # b1
            pl.BlockSpec((H, C), lambda i: (0, 0)),    # w2 (fully resident)
            pl.BlockSpec((1, C), lambda i: (0, 0)),    # b2
        ]
        out_specs = pl.BlockSpec((tm, C), lambda i: (i, 0))
        scratch_shapes = []
        out_dtype = x.dtype
        dim_sem = ("parallel",)
        bytes_accessed = (rows_p * C * x_item + rows_p * C * 4
                          + weight_bytes + (H + 3 * C) * 4)
        est_vmem = (weight_bytes + (H + 3 * C) * 4
                    + 2 * tm * C * x_item            # x double-buffered
                    + 2 * tm * C * 4                 # out double-buffered
                    + tm * H * 4                     # hidden activation
                    + 2 * tm * C * 4)                # LN temporaries headroom
    else:
        th = _pick_th(H, th)
        kernel = functools.partial(_ff_kernel_stream, exact_gelu=exact_gelu)
        grid = (n_row_tiles, H // th)
        in_specs = [
            pl.BlockSpec((tm, C), lambda i, h: (i, 0)),   # x rows (resident over h)
            pl.BlockSpec((1, C), lambda i, h: (0, 0)),    # ln gamma
            pl.BlockSpec((1, C), lambda i, h: (0, 0)),    # ln beta
            pl.BlockSpec((C, th), lambda i, h: (0, h)),   # w1 hidden chunk
            pl.BlockSpec((1, th), lambda i, h: (0, h)),   # b1 hidden chunk
            pl.BlockSpec((th, C), lambda i, h: (h, 0)),   # w2 hidden chunk
            pl.BlockSpec((1, C), lambda i, h: (0, 0)),    # b2
        ]
        out_specs = pl.BlockSpec((tm, C), lambda i, h: (i, 0))
        scratch_shapes = [pltpu.VMEM((tm, C), jnp.bfloat16)]   # cached LN output
        out_dtype = jnp.float32      # accumulate in f32 directly in o_ref
        dim_sem = ("parallel", "arbitrary")
        bytes_accessed = (rows_p * C * x_item + rows_p * C * 4
                          + n_row_tiles * weight_bytes + (H + 3 * C) * 4)
        est_vmem = (2 * (C * th * 2 + th * C * 2)    # weight chunks, double-buffered
                    + 2 * tm * C * x_item
                    + 2 * tm * C * 4
                    + tm * C * 2                     # xn scratch
                    + tm * th * 4                    # hidden chunk
                    + (H + 3 * C) * 4)

    vmem_limit = int(min(max(est_vmem + 8 * (1 << 20), 16 * (1 << 20)), 56 * (1 << 20)))

    out2d = pl.pallas_call(
        kernel,
        out_shape=jax.ShapeDtypeStruct((rows_p, C), out_dtype),
        grid_spec=pltpu.PrefetchScalarGridSpec(
            num_scalar_prefetch=0,
            grid=grid,
            in_specs=in_specs,
            out_specs=out_specs,
            scratch_shapes=scratch_shapes,
        ),
        compiler_params=pltpu.CompilerParams(
            dimension_semantics=dim_sem,
            vmem_limit_bytes=vmem_limit),
        cost_estimate=pl.CostEstimate(
            flops=flops,
            transcendentals=transcendentals,
            bytes_accessed=int(bytes_accessed)),
    )(x2d, gamma, beta, w1, b1, w2, b2)

    out2d = out2d[:rows]
    if out2d.dtype != x.dtype:
        out2d = out2d.astype(x.dtype)
    return out2d.reshape(B, N, C)


def init_params(key, dim, mlp_ratio=4):
    hidden = dim * mlp_ratio
    k1, k2, k3, k4 = jax.random.split(key, 4)
    # PyTorch Linear default init: U(-1/sqrt(fan_in), 1/sqrt(fan_in))
    lim1 = 1.0 / math.sqrt(dim)
    lim2 = 1.0 / math.sqrt(hidden)
    return {
        "gamma": jnp.ones((dim,), jnp.float32),
        "beta": jnp.zeros((dim,), jnp.float32),
        "w1": jax.random.uniform(k1, (dim, hidden), jnp.float32, -lim1, lim1),
        "b1": jax.random.uniform(k2, (hidden,), jnp.float32, -lim1, lim1),
        "w2": jax.random.uniform(k3, (hidden, dim), jnp.float32, -lim2, lim2),
        "b2": jax.random.uniform(k4, (dim,), jnp.float32, -lim2, lim2),
    }


def feed_forward_ref(x, p):
    # Pure-JAX f32 reference (exact erf GELU, matches torch.nn.GELU default).
    mean = jnp.mean(x, axis=-1, keepdims=True)
    var = jnp.mean((x - mean) ** 2, axis=-1, keepdims=True)
    xn = (x - mean) / jnp.sqrt(var + 1e-6) * p["gamma"] + p["beta"]
    h = xn @ p["w1"] + p["b1"]
    h = 0.5 * h * (1.0 + jax.lax.erf(h / math.sqrt(2.0)))
    return h @ p["w2"] + p["b2"]


if __name__ == "__main__":
    key = jax.random.PRNGKey(0)
    kx, kp = jax.random.split(key)

    # Small but MXU/lane-friendly shapes: C=128 (lane-dense output), H=512.
    B, N, dim = 2, 64, 128
    x = jax.random.normal(kx, (B, N, dim), jnp.float32)
    params = init_params(kp, dim, mlp_ratio=4)

    out = feed_forward(x, params)          # resident-weight path, grid=(1,)
    out = jax.block_until_ready(out)

    ref = feed_forward_ref(x, params)
    assert out.shape == (B, N, dim)
    # bf16 matmul operands + tanh-approx GELU => relaxed tolerance vs exact f32 reference.
    max_err = float(jnp.max(jnp.abs(out - ref)))
    assert jnp.allclose(out, ref, atol=5e-2, rtol=5e-2), \
        f"mismatch vs reference (max abs err {max_err})"
    # TODO(synk): Dropout(p) is implemented as identity (p=0 / eval semantics only).
    print("KERNEL_OK")
</pallas_src>

<mosaic_0001>
module attributes {stable_mosaic.version = 11 : i64} {
  func.func @_ff_kernel_resident(%arg0: i32, %arg1: memref<128x128xf32, #tpu.memory_space<vmem>>, %arg2: memref<1x128xf32, #tpu.memory_space<vmem>>, %arg3: memref<1x128xf32, #tpu.memory_space<vmem>>, %arg4: memref<128x512xbf16, #tpu.memory_space<vmem>>, %arg5: memref<1x512xf32, #tpu.memory_space<vmem>>, %arg6: memref<512x128xbf16, #tpu.memory_space<vmem>>, %arg7: memref<1x128xf32, #tpu.memory_space<vmem>>, %arg8: memref<128x128xf32, #tpu.memory_space<vmem>>) attributes {dimension_semantics = [#tpu.dimension_semantics<parallel>], iteration_bounds = array<i64: 1>, scalar_prefetch = 0 : i64, scratch_operands = 0 : i64, tpu.core_type = #tpu.core_type<tc>, window_params = [{transform_indices = @transform_0, window_bounds = array<i64: 128, 128>}, {pipeline_mode = #tpu.pipeline_mode<synchronous>, transform_indices = @transform_1, window_bounds = array<i64: 1, 128>}, {pipeline_mode = #tpu.pipeline_mode<synchronous>, transform_indices = @transform_2, window_bounds = array<i64: 1, 128>}, {pipeline_mode = #tpu.pipeline_mode<synchronous>, transform_indices = @transform_3, window_bounds = array<i64: 128, 512>}, {pipeline_mode = #tpu.pipeline_mode<synchronous>, transform_indices = @transform_4, window_bounds = array<i64: 1, 512>}, {pipeline_mode = #tpu.pipeline_mode<synchronous>, transform_indices = @transform_5, window_bounds = array<i64: 512, 128>}, {pipeline_mode = #tpu.pipeline_mode<synchronous>, transform_indices = @transform_6, window_bounds = array<i64: 1, 128>}, {transform_indices = @transform_7, window_bounds = array<i64: 128, 128>}]} {
    %c0 = arith.constant 0 : index
    %c0_0 = arith.constant 0 : index
    %0 = vector.load %arg1[%c0, %c0_0] : memref<128x128xf32, #tpu.memory_space<vmem>>, vector<128x128xf32>
    %c0_1 = arith.constant 0 : index
    %c0_2 = arith.constant 0 : index
    %1 = vector.load %arg2[%c0_1, %c0_2] : memref<1x128xf32, #tpu.memory_space<vmem>>, vector<1x128xf32>
    %c0_3 = arith.constant 0 : index
    %c0_4 = arith.constant 0 : index
    %2 = vector.load %arg3[%c0_3, %c0_4] : memref<1x128xf32, #tpu.memory_space<vmem>>, vector<1x128xf32>
    %cst = arith.constant dense<0.000000e+00> : vector<128xf32>
    %3 = vector.multi_reduction <add>, %0, %cst [1] : vector<128x128xf32> to vector<128xf32>
    %4 = vector.shape_cast %3 : vector<128xf32> to vector<128x1xf32>
    %cst_5 = arith.constant 1.280000e+02 : f32
    %5 = vector.broadcast %cst_5 : f32 to vector<128x1xf32>
    %6 = arith.divf %4, %5 : vector<128x1xf32>
    %7 = vector.broadcast %6 : vector<128x1xf32> to vector<128x128xf32>
    %8 = arith.subf %0, %7 : vector<128x128xf32>
    %9 = arith.mulf %8, %8 : vector<128x128xf32>
    %cst_6 = arith.constant dense<0.000000e+00> : vector<128xf32>
    %10 = vector.multi_reduction <add>, %9, %cst_6 [1] : vector<128x128xf32> to vector<128xf32>
    %11 = vector.shape_cast %10 : vector<128xf32> to vector<128x1xf32>
    %cst_7 = arith.constant 1.280000e+02 : f32
    %12 = vector.broadcast %cst_7 : f32 to vector<128x1xf32>
    %13 = arith.divf %11, %12 : vector<128x1xf32>
    %cst_8 = arith.constant 9.99999997E-7 : f32
    %14 = vector.broadcast %cst_8 : f32 to vector<128x1xf32>
    %15 = arith.addf %13, %14 : vector<128x1xf32>
    %16 = math.rsqrt %15 : vector<128x1xf32>
    %17 = vector.broadcast %16 : vector<128x1xf32> to vector<128x128xf32>
    %18 = arith.mulf %8, %17 : vector<128x128xf32>
    %19 = vector.broadcast %1 : vector<1x128xf32> to vector<128x128xf32>
    %20 = arith.mulf %18, %19 : vector<128x128xf32>
    %21 = vector.broadcast %2 : vector<1x128xf32> to vector<128x128xf32>
    %22 = arith.addf %20, %21 : vector<128x128xf32>
    %23 = arith.truncf %22 : vector<128x128xf32> to vector<128x128xbf16>
    %c0_9 = arith.constant 0 : index
    %c0_10 = arith.constant 0 : index
    %24 = vector.load %arg4[%c0_9, %c0_10] : memref<128x512xbf16, #tpu.memory_space<vmem>>, vector<128x512xbf16>
    %cst_11 = arith.constant dense<0.000000e+00> : vector<128x512xf32>
    %25 = tpu.matmul %23, %24, %cst_11 {dimension_numbers = #tpu.dot_dimension_numbers<[1], [0], [0], [1], [0, 0, 1, 1], [], []>} : vector<128x128xbf16>, vector<128x512xbf16>, vector<128x512xf32> -> vector<128x512xf32>
    %c0_12 = arith.constant 0 : index
    %c0_13 = arith.constant 0 : index
    %26 = vector.load %arg5[%c0_12, %c0_13] : memref<1x512xf32, #tpu.memory_space<vmem>>, vector<1x512xf32>
    %27 = vector.broadcast %26 : vector<1x512xf32> to vector<128x512xf32>
    %28 = arith.addf %25, %27 : vector<128x512xf32>
    %29 = arith.mulf %28, %28 : vector<128x512xf32>
    %30 = arith.mulf %28, %29 : vector<128x512xf32>
    %cst_14 = arith.constant 4.471500e-02 : f32
    %31 = vector.broadcast %cst_14 : f32 to vector<128x512xf32>
    %32 = arith.mulf %31, %30 : vector<128x512xf32>
    %33 = arith.addf %28, %32 : vector<128x512xf32>
    %cst_15 = arith.constant 0.797884583 : f32
    %34 = vector.broadcast %cst_15 : f32 to vector<128x512xf32>
    %35 = arith.mulf %34, %33 : vector<128x512xf32>
    %36 = math.tanh %35 : vector<128x512xf32>
    %cst_16 = arith.constant 1.000000e+00 : f32
    %37 = vector.broadcast %cst_16 : f32 to vector<128x512xf32>
    %38 = arith.addf %37, %36 : vector<128x512xf32>
    %cst_17 = arith.constant 5.000000e-01 : f32
    %39 = vector.broadcast %cst_17 : f32 to vector<128x512xf32>
    %40 = arith.mulf %39, %38 : vector<128x512xf32>
    %41 = arith.mulf %28, %40 : vector<128x512xf32>
    %42 = arith.truncf %41 : vector<128x512xf32> to vector<128x512xbf16>
    %c0_18 = arith.constant 0 : index
    %c0_19 = arith.constant 0 : index
    %43 = vector.load %arg6[%c0_18, %c0_19] : memref<512x128xbf16, #tpu.memory_space<vmem>>, vector<512x128xbf16>
    %cst_20 = arith.constant dense<0.000000e+00> : vector<128x128xf32>
    %44 = tpu.matmul %42, %43, %cst_20 {dimension_numbers = #tpu.dot_dimension_numbers<[1], [0], [0], [1], [0, 0, 1, 1], [], []>} : vector<128x512xbf16>, vector<512x128xbf16>, vector<128x128xf32> -> vector<128x128xf32>
    %c0_21 = arith.constant 0 : index
    %c0_22 = arith.constant 0 : index
    %45 = vector.load %arg7[%c0_21, %c0_22] : memref<1x128xf32, #tpu.memory_space<vmem>>, vector<1x128xf32>
    %46 = vector.broadcast %45 : vector<1x128xf32> to vector<128x128xf32>
    %47 = arith.addf %44, %46 : vector<128x128xf32>
    %c0_23 = arith.constant 0 : index
    %c0_24 = arith.constant 0 : index
    %48 = vector.load %arg8[%c0_23, %c0_24] : memref<128x128xf32, #tpu.memory_space<vmem>>, vector<128x128xf32>
    tpu.vector_store %arg8[%c0_23, %c0_24], %47 {strides = array<i32>} : memref<128x128xf32, #tpu.memory_space<vmem>>, vector<128x128xf32>,
    return
  }
  func.func @transform_0(%arg0: i32) -> (i32, i32) {
    %c0_i32 = arith.constant 0 : i32
    %c0_i32_0 = arith.constant 0 : i32
    return %arg0, %c0_i32 : i32, i32
  }
  func.func @transform_1(%arg0: i32) -> (i32, i32) {
    %c0_i32 = arith.constant 0 : i32
    %c0_i32_0 = arith.constant 0 : i32
    %c0_i32_1 = arith.constant 0 : i32
    return %c0_i32, %c0_i32_0 : i32, i32
  }
  func.func @transform_2(%arg0: i32) -> (i32, i32) {
    %c0_i32 = arith.constant 0 : i32
    %c0_i32_0 = arith.constant 0 : i32
    %c0_i32_1 = arith.constant 0 : i32
    return %c0_i32, %c0_i32_0 : i32, i32
  }
  func.func @transform_3(%arg0: i32) -> (i32, i32) {
    %c0_i32 = arith.constant 0 : i32
    %c0_i32_0 = arith.constant 0 : i32
    %c0_i32_1 = arith.constant 0 : i32
    return %c0_i32, %c0_i32_0 : i32, i32
  }
  func.func @transform_4(%arg0: i32) -> (i32, i32) {
    %c0_i32 = arith.constant 0 : i32
    %c0_i32_0 = arith.constant 0 : i32
    %c0_i32_1 = arith.constant 0 : i32
    return %c0_i32, %c0_i32_0 : i32, i32
  }
  func.func @transform_5(%arg0: i32) -> (i32, i32) {
    %c0_i32 = arith.constant 0 : i32
    %c0_i32_0 = arith.constant 0 : i32
    %c0_i32_1 = arith.constant 0 : i32
    return %c0_i32, %c0_i32_0 : i32, i32
  }
  func.func @transform_6(%arg0: i32) -> (i32, i32) {
    %c0_i32 = arith.constant 0 : i32
    %c0_i32_0 = arith.constant 0 : i32
    %c0_i32_1 = arith.constant 0 : i32
    return %c0_i32, %c0_i32_0 : i32, i32
  }
  func.func @transform_7(%arg0: i32) -> (i32, i32) {
    %c0_i32 = arith.constant 0 : i32
    %c0_i32_0 = arith.constant 0 : i32
    return %arg0, %c0_i32 : i32, i32
  }
}

</mosaic_0001>

<bundles_post_ra>
// kernel: tpu_custom_call.1
= control target key start
LH: loop header
LB: loop body
LE: loop exit
PB: predicated region body
PF: predicated region fallthrough
CT: control target
= control target key end

     0   :  { %12 = vsyncpa [#allocation3], 0  ;;  %s3798_s0 = inlined_call_operand.hbm [shape: f32[128,128], index: 0, kind: input, shape index: {}]   ;;  %s3799_s1 = inlined_call_operand.hbm [shape: f32[1,128], index: 1, kind: input, shape index: {}]   ;;  %s3800_s2 = inlined_call_operand.vmem [shape: f32[1,128], index: 2, kind: input, shape index: {}]   ;;  %s3801_s3 = inlined_call_operand.hbm [shape: bf16[128,512], index: 3, kind: input, shape index: {}]   ;;  %s3802_s4 = inlined_call_operand.hbm [shape: f32[1,512], index: 4, kind: input, shape index: {}]   ;;  %s3803_s5 = inlined_call_operand.hbm [shape: bf16[512,128], index: 5, kind: input, shape index: {}]   ;;  %s3804_s6 = inlined_call_operand.vmem [shape: f32[1,128], index: 6, kind: input, shape index: {}]   ;;  %s3805_s7 = inlined_call_operand.hbm [shape: f32[128,128], index: 7, kind: output, shape index: {}]  }
   0x1   :  { %13 = vsyncpa [#allocation6], 0 }
   0x2   :  { %14 = vsyncpa [#allocation9], 0  ;;  %s34_s26 = sshll.u32 %s3799_s1, 4  ;;  %s35_s26 = int_to_ptr.hbm [resolvable:$true] %s34_s26 }
   0x3   :  { %15 = vsyncpa [#allocation4], 0  ;;  %s2643_s27 = smov [#allocation5]   ;;  %s60_s8 = sshll.u32 %s3802_s4, 4  ;;  %s61_s8 = int_to_ptr.hbm [resolvable:$true] %s60_s8 }
   0x4   :  { %s36_s28 = sshll.u32 %s2643_s27, 4  ;;  %s2644_s9 = smov [#allocation8]   ;;  %s37_s28 = int_to_ptr.vmem [resolvable:$true] %s36_s28 }
   0x5   :  { %39 = dma.hbm_to_vmem [thread:$0]  %s35_s26, 16, %s37_s28, [#allocation6]  }
   0x6   :  { %s62_s10 = sshll.u32 %s2644_s9, 4  ;;  %s20_s13 = sshll.u32 %s3798_s0, 4  ;;  %s63_s10 = int_to_ptr.vmem [resolvable:$true] %s62_s10  ;;  %s21_s13 = int_to_ptr.hbm [resolvable:$true] %s20_s13 }
   0x7   :  { %65 = dma.hbm_to_vmem [thread:$0]  %s61_s8, 64, %s63_s10, [#allocation9]  }
   0x8   :  { %s2645_s1 = smov [#allocation2]   ;;  %s46_s17 = sshll.u32 %s3801_s3, 4  ;;  %s47_s17 = int_to_ptr.hbm [resolvable:$true] %s46_s17 }
   0x9   :  { %s22_s14 = sshll.u32 %s2645_s1, 4  ;;  %s2646_s18 = smov 128   ;;  %s23_s14 = int_to_ptr.vmem [resolvable:$true] %s22_s14 }
   0xa   :  { %s2647_s4 = smov 8   ;;  %s2648_s19 = smov [#allocation7]  }
   0xb   :  { %28 = dma.hbm_to_vmem [thread:$0]  %s21_s13, 2048, %s23_s14, [#allocation3], %s2646_s18, %s2646_s18, %s2647_s4  }
   0xc   :  { %s48_s20 = sshll.u32 %s2648_s19, 4  ;;  %s2649_s0 = smov 256   ;;  %s49_s20 = int_to_ptr.vmem [resolvable:$true] %s48_s20 }
   0xd   :  { %s2650_s21 = smov 16   ;;  %s70_s24 = sshll.u32 %s3803_s5, 4  ;;  %s71_s24 = int_to_ptr.hbm [resolvable:$true] %s70_s24 }
   0xe   :  { %54 = dma.hbm_to_vmem [thread:$0]  %s47_s17, 4096, %s49_s20, [#allocation6], %s2649_s0, %s2649_s0, %s2650_s21  }
   0xf   :  { %s2651_s25 = smov [#allocation10]   ;;  %s2652_s26 = smov 64  }
  0x10   :  { %s72_s3 = sshll.u32 %s2651_s25, 4  ;;  %s2653_s27 = smov 4   ;;  %s73_s3 = int_to_ptr.vmem [resolvable:$true] %s72_s3 }
  0x11   :  { %78 = dma.hbm_to_vmem [thread:$0]  %s71_s24, 4096, %s73_s3, [#allocation9], %s2652_s26, %s2652_s26, %s2653_s27  }
  0x12   :  { %2635 = dma.done.wait [#allocation3], 2048  }
  0x13   :  { %2636 = vsyncadd [#allocation3], 4294965248 }
  0x14   :  { %2637 = dma.done.wait [#allocation6], 4112  }
  0x15   :  { %2638 = vsyncadd [#allocation6], 4294963184 }
  0x16   :  { %2639 = dma.done.wait [#allocation9], 4160  }
  0x17   :  { %2640 = vsyncadd [#allocation9], 4294963136  ;;  %v103_v0 = vld [vmem:[#allocation2 + $0x10] sm:$0xff]  ;;  %v101_v1 = vld [vmem:[#allocation2] sm:$0xff]  ;;  %v2654_v7 = vmov 128.0   ;;  %s1976_s12 = sshll.u32 %s3805_s7, 4  ;;  %s1977_s12 = int_to_ptr.hbm [resolvable:$true] %s1976_s12 }
  0x18   :  { %123 = vadd.xlane.f32.xlu1 %v103_v0  ;;  %119 = vadd.xlane.f32.xlu0 %v101_v1  ;;  %v105_v2 = vld [vmem:[#allocation2 + $0x20] sm:$0xff]  ;;  %v104_v3 = vld [vmem:[#allocation2 + $0x18] sm:$0xff]  ;;  %v102_v4 = vld [vmem:[#allocation2 + $0x8] sm:$0xff]  ;;  %2327 = vrcp.f32 %v2654_v7 }
  0x19   :  { %127 = vadd.xlane.f32.xlu2 %v105_v2  ;;  %v106_v5 = vld [vmem:[#allocation2 + $0x28] sm:$0xff]  ;;  %v107_v6 = vld [vmem:[#allocation2 + $0x30] sm:$0xff]  ;;  %v2729_v28 = vld [vmem:[#allocation2 + $0x38] sm:$0xff] }
  0x1a   :  { %v2743_v36 = vld [vmem:[#allocation2 + $0x40] sm:$0xff]  ;;  %v2753_v42 = vld [vmem:[#allocation2 + $0x58] sm:$0xff]  ;;  %v2755_v43 = vld [vmem:[#allocation2 + $0x48] sm:$0xff] }
  0x1b   :  { %v2763_v46 = vld [vmem:[#allocation2 + $0x60] sm:$0xff]  ;;  %v2765_v47 = vld [vmem:[#allocation2 + $0x50] sm:$0xff]  ;;  %v2769_v48 = vld [vmem:[#allocation2 + $0x68] sm:$0xff] }
  0x1c   :  { %v2772_v49 = vld [vmem:[#allocation2 + $0x70] sm:$0xff]  ;;  %v2105_v50 = vld [vmem:[#allocation7 + $0xe0] sm:$0xf]  ;;  %v2275_v52 = vld [vmem:[#allocation7 + $0xe4] sm:$0xf] }
  0x1d   :  { %v2277_v51 = vld [vmem:[#allocation7 + $0xec] sm:$0xf0]  ;;  %v2107_v54 = vld [vmem:[#allocation7 + $0xf0] sm:$0xf0]  ;;  %v2113_v55 = vld [vmem:[#allocation7 + $0xe8] sm:$0xf] }
  0x1e   :  { %v2328_v8 = vpop.eup %2327  ;;  %v2106_v53 = vor.u32 %v2277_v51, %v2105_v50  ;;  %v2278_v56 = vld [vmem:[#allocation7 + $0xf4] sm:$0xf0]  ;;  %v2110_v57 = vor.u32 %v2275_v52, %v2107_v54  ;;  %v2276_v59 = vld [vmem:[#allocation7 + $0xec] sm:$0xf]  ;;  %v2115_v60 = vld [vmem:[#allocation7 + $0xf8] sm:$0xf0] }
  0x1f   :  { %v152_v9 = vmul.f32 128.0, %v2328_v8  ;;  %vm156_vm0 = vweird.f32 %v2328_v8  ;;  %v2114_v58 = vor.u32 %v2278_v56, %v2113_v55  ;;  %v2118_v61 = vor.u32 %v2276_v59, %v2115_v60  ;;  %v2089_v62 = vld [vmem:[#allocation7 + $0xc0] sm:$0xf]  ;;  %v2273_v63 = vld [vmem:[#allocation7 + $0xcc] sm:$0xf0] }
  0x20   :  { %125 = vadd.xlane.f32.xlu1 %v104_v3  ;;  %121 = vadd.xlane.f32.xlu0 %v102_v4  ;;  %v2272_v7 = vld [vmem:[#allocation7 + $0xcc] sm:$0xf]  ;;  %v2041_v50 = vld [vmem:[#allocation7 + $0x60] sm:$0xf]  ;;  %v2261_v51 = vld [vmem:[#allocation7 + $0x6c] sm:$0xf0] }
  0x21   :  { %129 = vadd.xlane.f32.xlu2 %v106_v5  ;;  %v153_v10 = vsub.f32 1.0, %v152_v9  ;;  %694 = vmatpush.bf16.msra.mxu0 %v2106_v53  ;;  %v2259_v52 = vld [vmem:[#allocation7 + $0x64] sm:$0xf]  ;;  %v2042_v53 = vor.u32 %v2261_v51, %v2041_v50  ;;  %v2043_v54 = vld [vmem:[#allocation7 + $0x70] sm:$0xf0] }
  0x22   :  { %743 = vmatpush.bf16.msra.mxu1 %v2110_v57  ;;  %792 = vmatpush.bf16.msra.mxu2 %v2114_v58  ;;  %v2049_v55 = vld [vmem:[#allocation7 + $0x68] sm:$0xf]  ;;  %v2262_v56 = vld [vmem:[#allocation7 + $0x74] sm:$0xf0]  ;;  %v2046_v57 = vor.u32 %v2259_v52, %v2043_v54  ;;  %v2260_v59 = vld [vmem:[#allocation7 + $0x6c] sm:$0xf] }
  0x23   :  { %v154_v11 = vmul.f32 %v2328_v8, %v153_v10  ;;  %841 = vmatpush.bf16.msra.mxu3 %v2118_v61  ;;  %v2073_v10 = vld [vmem:[#allocation7 + $0xa0] sm:$0xf]  ;;  %v2050_v58 = vor.u32 %v2262_v56, %v2049_v55  ;;  %v2051_v60 = vld [vmem:[#allocation7 + $0x78] sm:$0xf0] }
  0x24   :  { %v2054_v61 = vor.u32 %v2260_v59, %v2051_v60  ;;  %v2003_v50 = vld [vmem:[#allocation7 + $0x18] sm:$0xf0] }
  0x25   :  { %v155_v12 = vadd.f32 %v2328_v8, %v154_v11  ;;  %v2269_v11 = vld [vmem:[#allocation7 + $0xac] sm:$0xf0] }
  0x27   :  { %v2714_v13 = vsel %vm156_vm0, %v2328_v8, %v155_v12  ;;  %v2099_v8 = vld [vmem:[#allocation7 + $0xd8] sm:$0xf0]  ;;  %v2267_v12 = vld [vmem:[#allocation7 + $0xa4] sm:$0xf] }
  0x28   :  { %v2102_v9 = vor.u32 %v2272_v7, %v2099_v8  ;;  %v2256_v7 = vld [vmem:[#allocation7 + $0x4c] sm:$0xf]  ;;  %v2035_v8 = vld [vmem:[#allocation7 + $0x58] sm:$0xf0] }
  0x29   :  { %131 = vadd.xlane.f32.xlu2 %v107_v6 }
  0x2a   :  { %842 = vmatpush.bf16.msra.mxu3 %v2102_v9  ;;  %v2038_v9 = vor.u32 %v2256_v7, %v2035_v8 }
  0x8b   :  { %v124_v14 = vpop.xlane.xlu1 %123  ;;  %v120_v15 = vpop.xlane.xlu0 %119 }
  0x8c   :  { %v158_v16 = vmul.f32 %v2714_v13, %v120_v15  ;;  %v128_v18 = vpop.xlane.xlu2 %127  ;;  %v160_v27 = vmul.f32 %v2714_v13, %v124_v14  ;;  %v2074_v14 = vor.u32 %v2269_v11, %v2073_v10  ;;  %v2075_v15 = vld [vmem:[#allocation7 + $0xb0] sm:$0xf0]  ;;  %v2009_v10 = vld [vmem:[#allocation7 + $0x20] sm:$0xf]  ;;  %v2253_v11 = vld [vmem:[#allocation7 + $0x2c] sm:$0xf0] }
  0x8d   :  { %v162_v26 = vmul.f32 %v2714_v13, %v128_v18  ;;  %v2270_v18 = vld [vmem:[#allocation7 + $0xb4] sm:$0xf0] }
  0x8e   :  { %v2717_v17 = vsub.f32 %v101_v1, %v158_v16  ;;  %v2738_v33 = vsub.f32 %v103_v0, %v160_v27  ;;  %v2271_v0 = vld [vmem:[#allocation7 + $0xc4] sm:$0xf]  ;;  %v2090_v1 = vor.u32 %v2273_v63, %v2089_v62  ;;  %v2081_v16 = vld [vmem:[#allocation7 + $0xa8] sm:$0xf]  ;;  %v2265_v27 = vld [vmem:[#allocation7 + $0x8c] sm:$0xf0] }
  0x8f   :  { %v2736_v32 = vsub.f32 %v105_v2, %v162_v26  ;;  %v2091_v2 = vld [vmem:[#allocation7 + $0xd0] sm:$0xf0]  ;;  %v2057_v26 = vld [vmem:[#allocation7 + $0x80] sm:$0xf]  ;;  %v2257_v63 = vld [vmem:[#allocation7 + $0x4c] sm:$0xf0] }
  0x90   :  { %v190_v19 = vmul.f32 %v2717_v17, %v2717_v17  ;;  %v192_v37 = vmul.f32 %v2738_v33, %v2738_v33  ;;  %695 = vmatpush.bf16.msra.mxu0 %v2090_v1  ;;  %v2025_v62 = vld [vmem:[#allocation7 + $0x40] sm:$0xf] }
  0x91   :  { %v194_v34 = vmul.f32 %v2736_v32, %v2736_v32  ;;  %v2026_v1 = vor.u32 %v2257_v63, %v2025_v62 }
  0x92   :  { %206 = vadd.xlane.f32.xlu0 %v190_v19  ;;  %v2078_v19 = vor.u32 %v2267_v12, %v2075_v15  ;;  %v2251_v12 = vld [vmem:[#allocation7 + $0x24] sm:$0xf]  ;;  %v2010_v15 = vor.u32 %v2253_v11, %v2009_v10 }
  0x93   :  { %v126_v20 = vpop.xlane.xlu1 %125  ;;  %v122_v21 = vpop.xlane.xlu0 %121 }
  0x94   :  { %v161_v22 = vmul.f32 %v2714_v13, %v126_v20  ;;  %v159_v23 = vmul.f32 %v2714_v13, %v122_v21  ;;  %v130_v31 = vpop.xlane.xlu2 %129  ;;  %v2082_v20 = vor.u32 %v2270_v18, %v2081_v16  ;;  %v2268_v21 = vld [vmem:[#allocation7 + $0xac] sm:$0xf]  ;;  %696 = vmatpush.bf16.msra.mxu0 %v2074_v14  ;;  %v2011_v16 = vld [vmem:[#allocation7 + $0x30] sm:$0xf0]  ;;  %v2017_v18 = vld [vmem:[#allocation7 + $0x28] sm:$0xf] }
  0x95   :  { %v163_v35 = vmul.f32 %v2714_v13, %v130_v31  ;;  %v2059_v31 = vld [vmem:[#allocation7 + $0x90] sm:$0xf0] }
  0x96   :  { %v2723_v24 = vsub.f32 %v104_v3, %v161_v22  ;;  %v2725_v25 = vsub.f32 %v102_v4, %v159_v23  ;;  %v2097_v3 = vld [vmem:[#allocation7 + $0xc8] sm:$0xf]  ;;  %v2274_v4 = vld [vmem:[#allocation7 + $0xd4] sm:$0xf0]  ;;  %v2083_v22 = vld [vmem:[#allocation7 + $0xb8] sm:$0xf0] }
  0x97   :  { %v2748_v38 = vsub.f32 %v106_v5, %v163_v35  ;;  %v2094_v5 = vor.u32 %v2271_v0, %v2091_v2  ;;  %v2086_v23 = vor.u32 %v2268_v21, %v2083_v22  ;;  %v2266_v35 = vld [vmem:[#allocation7 + $0x94] sm:$0xf0]  ;;  %v2255_v0 = vld [vmem:[#allocation7 + $0x44] sm:$0xf]  ;;  %v2027_v2 = vld [vmem:[#allocation7 + $0x50] sm:$0xf0] }
  0x98   :  { %v193_v29 = vmul.f32 %v2723_v24, %v2723_v24  ;;  %v191_v30 = vmul.f32 %v2725_v25, %v2725_v25  ;;  %v2254_v21 = vld [vmem:[#allocation7 + $0x34] sm:$0xf0]  ;;  %v2252_v22 = vld [vmem:[#allocation7 + $0x2c] sm:$0xf] }
  0x99   :  { %v195_v40 = vmul.f32 %v2748_v38, %v2748_v38  ;;  %744 = vmatpush.bf16.msra.mxu1 %v2094_v5  ;;  %843 = vmatpush.bf16.msra.mxu3 %v2086_v23  ;;  %v2030_v5 = vor.u32 %v2255_v0, %v2027_v2  ;;  %v2019_v23 = vld [vmem:[#allocation7 + $0x38] sm:$0xf0] }
  0x9a   :  { %212 = vadd.xlane.f32.xlu2 %v193_v29  ;;  %133 = vadd.xlane.f32.xlu0 %v2729_v28  ;;  %v2263_v29 = vld [vmem:[#allocation7 + $0x84] sm:$0xf] }
  0x9b   :  { %208 = vadd.xlane.f32.xlu1 %v191_v30  ;;  %v2058_v30 = vor.u32 %v2265_v27, %v2057_v26  ;;  %v2018_v26 = vor.u32 %v2254_v21, %v2017_v18  ;;  %v2022_v27 = vor.u32 %v2252_v22, %v2019_v23 }
  0x9c   :  { %v132_v39 = vpop.xlane.xlu2 %131 }
  0x9d   :  { %v164_v41 = vmul.f32 %v2714_v13, %v132_v39  ;;  %745 = vmatpush.bf16.msra.mxu1 %v2078_v19  ;;  %697 = vmatpush.bf16.msra.mxu0 %v2058_v30  ;;  %v1993_v30 = vld [vmem:[#allocation7] sm:$0xf] }
  0x9f   :  { %v2758_v44 = vsub.f32 %v107_v6, %v164_v41  ;;  %v2098_v6 = vor.u32 %v2274_v4, %v2097_v3  ;;  %v2067_v41 = vld [vmem:[#allocation7 + $0x98] sm:$0xf0]  ;;  %v2033_v3 = vld [vmem:[#allocation7 + $0x48] sm:$0xf]  ;;  %v2258_v4 = vld [vmem:[#allocation7 + $0x54] sm:$0xf0] }
  0xa1   :  { %v196_v45 = vmul.f32 %v2758_v44, %v2758_v44  ;;  %793 = vmatpush.bf16.msra.mxu2 %v2098_v6  ;;  %698 = vmatpush.bf16.msra.mxu0 %v2042_v53  ;;  %v2034_v6 = vor.u32 %v2258_v4, %v2033_v3 }
  0xa2   :  { %214 = vadd.xlane.f32.xlu2 %v194_v34  ;;  %135 = vadd.xlane.f32.xlu0 %v2743_v36  ;;  %v2065_v34 = vld [vmem:[#allocation7 + $0x88] sm:$0xf] }
  0xa3   :  { %210 = vadd.xlane.f32.xlu1 %v192_v37  ;;  %v2062_v37 = vor.u32 %v2263_v29, %v2059_v31  ;;  %v2066_v39 = vor.u32 %v2266_v35, %v2065_v34  ;;  %v2249_v31 = vld [vmem:[#allocation7 + $0xc] sm:$0xf0]  ;;  %v2247_v35 = vld [vmem:[#allocation7 + $0x4] sm:$0xf] }
  0xa4   :  { %v1994_v34 = vor.u32 %v2249_v31, %v1993_v30 }
  0xa5   :  { %794 = vmatpush.bf16.msra.mxu2 %v2082_v20  ;;  %746 = vmatpush.bf16.msra.mxu1 %v2062_v37  ;;  %v2014_v20 = vor.u32 %v2251_v12, %v2011_v16  ;;  %v1995_v37 = vld [vmem:[#allocation7 + $0x10] sm:$0xf0] }
  0xa6   :  { %699 = vmatpush.bf16.msra.mxu0 %v2026_v1 }
  0xa9   :  { %795 = vmatpush.bf16.msra.mxu2 %v2066_v39  ;;  %747 = vmatpush.bf16.msra.mxu1 %v2046_v57  ;;  %v2001_v39 = vld [vmem:[#allocation7 + $0x8] sm:$0xf] }
  0xaa   :  { %141 = vadd.xlane.f32.xlu2 %v2753_v42  ;;  %216 = vadd.xlane.f32.xlu0 %v195_v40  ;;  %v2264_v40 = vld [vmem:[#allocation7 + $0x8c] sm:$0xf] }
  0xab   :  { %137 = vadd.xlane.f32.xlu1 %v2755_v43  ;;  %700 = vmatpush.bf16.msra.mxu0 %v2010_v15 }
  0xad   :  { %796 = vmatpush.bf16.msra.mxu2 %v2050_v58  ;;  %748 = vmatpush.bf16.msra.mxu1 %v2030_v5 }
  0xaf   :  { %701 = vmatpush.bf16.msra.mxu0 %v1994_v34 }
  0xb1   :  { %797 = vmatpush.bf16.msra.mxu2 %v2034_v6  ;;  %749 = vmatpush.bf16.msra.mxu1 %v2014_v20 }
  0xb2   :  { %143 = vadd.xlane.f32.xlu2 %v2763_v46  ;;  %218 = vadd.xlane.f32.xlu0 %v196_v45  ;;  %v2070_v45 = vor.u32 %v2264_v40, %v2067_v41  ;;  %v1998_v40 = vor.u32 %v2247_v35, %v1995_v37  ;;  %v2250_v41 = vld [vmem:[#allocation7 + $0x14] sm:$0xf0] }
  0xb3   :  { %139 = vadd.xlane.f32.xlu1 %v2765_v47  ;;  %v2002_v51 = vor.u32 %v2250_v41, %v2001_v39 }
  0xb4   :  { %844 = vmatpush.bf16.msra.mxu3 %v2070_v45  ;;  %v2248_v45 = vld [vmem:[#allocation7 + $0xc] sm:$0xf] }
  0xb5   :  { %798 = vmatpush.bf16.msra.mxu2 %v2018_v26  ;;  %v2006_v52 = vor.u32 %v2248_v45, %v2003_v50  ;;  %750 = vmatpush.bf16.msra.mxu1 %v1998_v40 }
  0xb8   :  { %845 = vmatpush.bf16.msra.mxu3 %v2054_v61 }
  0xb9   :  { %799 = vmatpush.bf16.msra.mxu2 %v2002_v51 }
  0xba   :  { %145 = vadd.xlane.f32.xlu0 %v2769_v48 }
  0xbc   :  { %846 = vmatpush.bf16.msra.mxu3 %v2038_v9 }
  0xc0   :  { %847 = vmatpush.bf16.msra.mxu3 %v2022_v27 }
  0xc2   :  { %147 = vadd.xlane.f32.xlu0 %v2772_v49 }
  0xc4   :  { %848 = vmatpush.bf16.msra.mxu3 %v2006_v52  ;;  %v2827_v52 = vld [vmem:[#allocation5] ss:$0 sm:$0xff] }
 0x105   :  { %v207_v14 = vpop.xlane.xlu0 %206 }
 0x106   :  { %v238_v19 = vmul.f32 %v207_v14, %v2714_v13 }
 0x108   :  { %v254_v29 = vadd.f32 1e-06, %v238_v19 }
 0x10a   :  { %2329 = vrsqrt.f32 %v254_v29  ;;  %vm276_vm2 = vweird.f32 %v254_v29 }
 0x10d   :  { %v213_v53 = vpop.xlane.xlu2 %212  ;;  %v134_v54 = vpop.xlane.xlu0 %133 }
 0x10e   :  { %v241_v55 = vmul.f32 %v213_v53, %v2714_v13  ;;  %v209_v56 = vpop.xlane.xlu1 %208  ;;  %v165_v57 = vmul.f32 %v2714_v13, %v134_v54  ;;  %v2831_v54 = vld [vmem:[#allocation2 + $0x78] sm:$0xff] }
 0x10f   :  { %v239_v58 = vmul.f32 %v209_v56, %v2714_v13 }
 0x110   :  { %v2330_v59 = vpop.eup %2329  ;;  %v2779_v60 = vadd.f32 1e-06, %v241_v55  ;;  %v2782_v61 = vsub.f32 %v2729_v28, %v165_v57 }
 0x111   :  { %v271_v62 = vmul.f32 %v2330_v59, %v254_v29  ;;  %v255_v63 = vadd.f32 1e-06, %v239_v58  ;;  %vm277_vm1 = vweird.f32 %v2330_v59 }
 0x112   :  { %2331 = vrsqrt.f32 %v2779_v60  ;;  %v197_v0 = vmul.f32 %v2782_v61, %v2782_v61  ;;  %vm2804_vm4 = vmor %vm276_vm2, %vm277_vm1  ;;  %vm306_vm9 = vweird.f32 %v2779_v60 }
 0x113   :  { %v272_v1 = vmul.f32 %v2330_v59, %v271_v62  ;;  %2333 = vrsqrt.f32 %v255_v63  ;;  %vm286_vm3 = vweird.f32 %v255_v63 }
 0x114   :  { %220 = vadd.xlane.f32.xlu1 %v197_v0 }
 0x115   :  { %v273_v2 = vmul.f32 0.5, %v272_v1  ;;  %v215_v3 = vpop.xlane.xlu2 %214  ;;  %v136_v4 = vpop.xlane.xlu0 %135  ;;  %v2845_v1 = vld [vmem:[%s3800_s2] ss:$0 sm:$0xff] }
 0x116   :  { %v211_v5 = vpop.xlane.xlu1 %210  ;;  %v166_v6 = vmul.f32 %v2714_v13, %v136_v4  ;;  %v242_v11 = vmul.f32 %v215_v3, %v2714_v13 }
 0x117   :  { %v274_v7 = vsub.f32 1.5, %v273_v2  ;;  %v240_v28 = vmul.f32 %v211_v5, %v2714_v13 }
 0x118   :  { %v2789_v8 = vpop.eup %2331  ;;  %v2792_v9 = vsub.f32 %v2743_v36, %v166_v6  ;;  %v2802_v36 = vadd.f32 1e-06, %v242_v11 }
 0x119   :  { %v2334_v10 = vpop.eup %2333  ;;  %v2795_v12 = vadd.f32 1e-06, %v240_v28  ;;  %v275_v15 = vmul.f32 %v2330_v59, %v274_v7  ;;  %v301_v16 = vmul.f32 %v2789_v8, %v2779_v60  ;;  %vm307_vm10 = vweird.f32 %v2789_v8 }
 0x11a   :  { %v281_v14 = vmul.f32 %v2334_v10, %v255_v63  ;;  %v198_v19 = vmul.f32 %v2792_v9, %v2792_v9  ;;  %vm287_vm5 = vweird.f32 %v2334_v10  ;;  %vm2873_vm12 = vmor %vm306_vm9, %vm307_vm10  ;;  %vm316_vm15 = vweird.f32 %v2802_v36 }
 0x11b   :  { %2335 = vrsqrt.f32 %v2795_v12  ;;  %v279_v29 = vsel %vm2804_vm4, %v2330_v59, %v275_v15  ;;  %v302_v31 = vmul.f32 %v2789_v8, %v301_v16  ;;  %vm288_vm6 = vmor %vm286_vm3, %vm287_vm5  ;;  %vm296_vm7 = vweird.f32 %v2795_v12 }
 0x11c   :  { %v282_v18 = vmul.f32 %v2334_v10, %v281_v14  ;;  %222 = vadd.xlane.f32.xlu1 %v198_v19  ;;  %2337 = vrsqrt.f32 %v2802_v36  ;;  %v430_v45 = vmul.f32 %v279_v29, %v2717_v17 }
 0x11d   :  { %v142_v20 = vpop.xlane.xlu2 %141  ;;  %v217_v21 = vpop.xlane.xlu0 %216 }
 0x11e   :  { %v283_v23 = vmul.f32 0.5, %v282_v18  ;;  %v169_v26 = vmul.f32 %v2714_v13, %v142_v20  ;;  %v138_v27 = vpop.xlane.xlu1 %137  ;;  %v243_v30 = vmul.f32 %v217_v21, %v2714_v13  ;;  %v449_v0 = vmul.f32 %v2827_v52, %v430_v45 }
 0x11f   :  { %v167_v34 = vmul.f32 %v2714_v13, %v138_v27 }
 0x120   :  { %v284_v35 = vsub.f32 1.5, %v283_v23  ;;  %v2815_v37 = vsub.f32 %v2753_v42, %v169_v26  ;;  %v2817_v39 = vadd.f32 1e-06, %v243_v30  ;;  %v303_v42 = vmul.f32 0.5, %v302_v31 }
 0x121   :  { %v2336_v40 = vpop.eup %2335  ;;  %v2822_v41 = vsub.f32 %v2755_v43, %v167_v34  ;;  %v468_v15 = vadd.f32 %v2845_v1, %v449_v0 }
 0x122   :  { %v285_v50 = vmul.f32 %v2334_v10, %v284_v35  ;;  %v291_v51 = vmul.f32 %v2336_v40, %v2795_v12  ;;  %2339 = vrsqrt.f32 %v2817_v39  ;;  %v201_v53 = vmul.f32 %v2815_v37, %v2815_v37 }
 0x123   :  { %v199_v43 = vmul.f32 %v2822_v41, %v2822_v41  ;;  %v304_v2 = vsub.f32 1.5, %v303_v42  ;;  %vm297_vm8 = vweird.f32 %v2336_v40  ;;  %vm326_vm13 = vweird.f32 %v2817_v39 }
 0x124   :  { %v289_v55 = vsel %vm288_vm6, %v2334_v10, %v285_v50  ;;  %v292_v56 = vmul.f32 %v2336_v40, %v291_v51  ;;  %228 = vadd.xlane.f32.xlu0 %v201_v53  ;;  %149 = vadd.xlane.f32.xlu1 %v2831_v54  ;;  %vm2862_vm11 = vmor %vm296_vm7, %vm297_vm8 }
 0x125   :  { %v431_v17 = vmul.f32 %v289_v55, %v2725_v25  ;;  %v144_v57 = vpop.xlane.xlu2 %143  ;;  %v2836_v58 = vpop.xlane.xlu0 %218  ;;  %224 = vadd.xlane.f32.xlu2 %v199_v43  ;;  %v305_v60 = vmul.f32 %v2789_v8, %v304_v2 }
 0x126   :  { %v293_v59 = vmul.f32 0.5, %v292_v56  ;;  %v170_v62 = vmul.f32 %v2714_v13, %v144_v57  ;;  %v140_v63 = vpop.xlane.xlu1 %139  ;;  %v2847_v25 = vpop.eup %2337 }
 0x127   :  { %v168_v3 = vmul.f32 %v2714_v13, %v140_v63  ;;  %v450_v4 = vmul.f32 %v2827_v52, %v431_v17  ;;  %v311_v16 = vmul.f32 %v2847_v25, %v2802_v36  ;;  %v309_v26 = vsel %vm2873_vm12, %v2789_v8, %v305_v60 }
 0x128   :  { %v2340_v5 = vpop.eup %2339  ;;  %v294_v6 = vsub.f32 1.5, %v293_v59  ;;  %v2852_v7 = vsub.f32 %v2763_v46, %v170_v62  ;;  %v433_v34 = vmul.f32 %v309_v26, %v2723_v24  ;;  %vm317_vm0 = vweird.f32 %v2847_v25 }
 0x129   :  { %v321_v28 = vmul.f32 %v2340_v5, %v2817_v39  ;;  %v2858_v10 = vsub.f32 %v2765_v47, %v168_v3  ;;  %v469_v46 = vadd.f32 %v2845_v1, %v450_v4  ;;  %v312_v27 = vmul.f32 %v2847_v25, %v311_v16  ;;  %vm318_vm2 = vmor %vm316_vm15, %vm317_vm0 }
 0x12a   :  { %v295_v11 = vmul.f32 %v2336_v40, %v294_v6  ;;  %v202_v19 = vmul.f32 %v2852_v7, %v2852_v7  ;;  %vm327_vm14 = vweird.f32 %v2340_v5 }
 0x12b   :  { %v200_v47 = vmul.f32 %v2858_v10, %v2858_v10  ;;  %v484_v12 = vpack.c.bf16 %v469_v46, %v468_v15  ;;  %v322_v21 = vmul.f32 %v2340_v5, %v321_v28  ;;  %vm328_vm1 = vmor %vm326_vm13, %vm327_vm14 }
 0x12c   :  { %v299_v20 = vsel %vm2862_vm11, %v2336_v40, %v295_v11  ;;  %230 = vadd.xlane.f32.xlu1 %v202_v19  ;;  %v313_v40 = vmul.f32 0.5, %v312_v27 }
 0x12d   :  { %v146_v22 = vpop.xlane.xlu0 %145  ;;  %226 = vadd.xlane.f32.xlu2 %v200_v47  ;;  %702 = vmatmul.bf16.vlgmr.msra.gmra.mxu0 %v484_v12  ;;  %v432_v30 = vmul.f32 %v299_v20, %v2738_v33  ;;  %v323_v31 = vmul.f32 0.5, %v322_v21  ;;  %v452_v33 = vmul.f32 %v2827_v52, %v433_v34 }
 0x12e   :  { %v171_v23 = vmul.f32 %v2714_v13, %v146_v22  ;;  %751 = vmatmul.bf16.vlgmr.msra.gmra.mxu1 %v484_v12  ;;  %800 = vmatmul.bf16.vlgmr.msra.gmra.mxu2 %v484_v12  ;;  %v314_v42 = vsub.f32 1.5, %v313_v40 }
 0x12f   :  { %849 = vmatmul.bf16.vlgmr.msra.gmra.mxu3 %v484_v12  ;;  %v451_v8 = vmul.f32 %v2827_v52, %v432_v30  ;;  %v324_v45 = vsub.f32 1.5, %v323_v31  ;;  %v471_v55 = vadd.f32 %v2845_v1, %v452_v33 }
 0x130   :  { %v2888_v29 = vsub.f32 %v2769_v48, %v171_v23  ;;  %v315_v43 = vmul.f32 %v2847_v25, %v314_v42 }
 0x131   :  { %v470_v24 = vadd.f32 %v2845_v1, %v451_v8  ;;  %v325_v53 = vmul.f32 %v2340_v5, %v324_v45 }
 0x132   :  { %v203_v35 = vmul.f32 %v2888_v29, %v2888_v29  ;;  %v319_v17 = vsel %vm318_vm2, %v2847_v25, %v315_v43  ;;  %v244_v25 = vmul.f32 %v2836_v58, %v2714_v13 }
 0x133   :  { %v485_v39 = vpack.c.bf16 %v471_v55, %v470_v24  ;;  %v434_v57 = vmul.f32 %v319_v17, %v2736_v32 }
 0x135   :  { %v148_v50 = vpop.xlane.xlu0 %147  ;;  %232 = vadd.xlane.f32.xlu2 %v203_v35  ;;  %v453_v62 = vmul.f32 %v2827_v52, %v434_v57 }
 0x136   :  { %v172_v51 = vmul.f32 %v2714_v13, %v148_v50 }
 0x137   :  { %v472_v0 = vadd.f32 %v2845_v1, %v453_v62 }
 0x138   :  { %v2898_v48 = vsub.f32 %v2772_v49, %v172_v51  ;;  %v329_v49 = vsel %vm328_vm1, %v2340_v5, %v325_v53 }
 0x139   :  { %v435_v36 = vmul.f32 %v329_v49, %v2748_v38  ;;  %v260_v38 = vadd.f32 1e-06, %v244_v25 }
 0x13a   :  { %v204_v56 = vmul.f32 %v2898_v48, %v2898_v48 }
 0x13b   :  { %v454_v59 = vmul.f32 %v2827_v52, %v435_v36  ;;  %2341 = vrsqrt.f32 %v260_v38  ;;  %vm336_vm3 = vweird.f32 %v260_v38 }
 0x13c   :  { %234 = vadd.xlane.f32.xlu0 %v204_v56 }
 0x13d   :  { %707 = vmatmul.bf16.gmra.mxu0 %v485_v39  ;;  %v473_v63 = vadd.f32 %v2845_v1, %v454_v59 }
 0x13e   :  { %756 = vmatmul.bf16.gmra.mxu1 %v485_v39  ;;  %805 = vmatmul.bf16.gmra.mxu2 %v485_v39 }
 0x13f   :  { %854 = vmatmul.bf16.gmra.mxu3 %v485_v39  ;;  %v486_v2 = vpack.c.bf16 %v473_v63, %v472_v0 }
 0x141   :  { %v2342_v3 = vpop.eup %2341 }
 0x142   :  { %v331_v32 = vmul.f32 %v2342_v3, %v260_v38  ;;  %vm337_vm4 = vweird.f32 %v2342_v3 }
 0x143   :  { %vm338_vm5 = vmor %vm336_vm3, %vm337_vm4 }
 0x144   :  { %v332_v5 = vmul.f32 %v2342_v3, %v331_v32 }
 0x146   :  { %v333_v11 = vmul.f32 0.5, %v332_v5 }
 0x148   :  { %v334_v14 = vsub.f32 1.5, %v333_v11 }
 0x14a   :  { %v335_v58 = vmul.f32 %v2342_v3, %v334_v14 }
 0x14c   :  { %v339_v19 = vsel %vm338_vm5, %v2342_v3, %v335_v58 }
 0x14d   :  { %712 = vmatmul.bf16.gmra.mxu0 %v486_v2  ;;  %v436_v30 = vmul.f32 %v339_v19, %v2758_v44 }
 0x14e   :  { %761 = vmatmul.bf16.gmra.mxu1 %v486_v2  ;;  %810 = vmatmul.bf16.gmra.mxu2 %v486_v2 }
 0x14f   :  { %859 = vmatmul.bf16.gmra.mxu3 %v486_v2  ;;  %v455_v44 = vmul.f32 %v2827_v52, %v436_v30 }
 0x151   :  { %v474_v43 = vadd.f32 %v2845_v1, %v455_v44  ;;  %v2302_v44 = vld [vmem:[#allocation10 + $0xb8] sm:$0xff] }
 0x152   :  { %1856 = vmatpush.bf16.msrb.mxu2 %v2302_v44 }
 0x187   :  { %v221_v4 = vpop.xlane.xlu1 %220 }
 0x188   :  { %v245_v6 = vmul.f32 %v221_v4, %v2714_v13 }
 0x18a   :  { %v261_v28 = vadd.f32 1e-06, %v245_v6 }
 0x18c   :  { %2343 = vrsqrt.f32 %v261_v28  ;;  %vm346_vm7 = vweird.f32 %v261_v28 }
 0x18f   :  { %v223_v15 = vpop.xlane.xlu1 %222 }
 0x190   :  { %v246_v60 = vmul.f32 %v223_v15, %v2714_v13 }
 0x192   :  { %v2344_v46 = vpop.eup %2343  ;;  %v2918_v47 = vadd.f32 1e-06, %v246_v60 }
 0x193   :  { %v341_v16 = vmul.f32 %v2344_v46, %v261_v28  ;;  %vm347_vm6 = vweird.f32 %v2344_v46 }
 0x194   :  { %2345 = vrsqrt.f32 %v2918_v47  ;;  %vm348_vm8 = vmor %vm346_vm7, %vm347_vm6  ;;  %vm356_vm13 = vweird.f32 %v2918_v47 }
 0x195   :  { %v342_v18 = vmul.f32 %v2344_v46, %v341_v16 }
 0x197   :  { %v343_v12 = vmul.f32 0.5, %v342_v18  ;;  %v150_v22 = vpop.xlane.xlu1 %149  ;;  %v229_v27 = vpop.xlane.xlu0 %228 }
 0x198   :  { %v225_v21 = vpop.xlane.xlu2 %224  ;;  %v173_v26 = vmul.f32 %v2714_v13, %v150_v22  ;;  %v249_v50 = vmul.f32 %v229_v27, %v2714_v13 }
 0x199   :  { %v344_v20 = vsub.f32 1.5, %v343_v12  ;;  %v247_v23 = vmul.f32 %v225_v21, %v2714_v13 }
 0x19a   :  { %v2346_v34 = vpop.eup %2345  ;;  %v2925_v40 = vsub.f32 %v2831_v54, %v173_v26  ;;  %v2934_v53 = vadd.f32 1e-06, %v249_v50 }
 0x19b   :  { %v345_v31 = vmul.f32 %v2344_v46, %v344_v20  ;;  %v263_v35 = vadd.f32 1e-06, %v247_v23  ;;  %v351_v45 = vmul.f32 %v2346_v34, %v2918_v47  ;;  %vm357_vm11 = vweird.f32 %v2346_v34 }
 0x19c   :  { %v205_v33 = vmul.f32 %v2925_v40, %v2925_v40  ;;  %vm358_vm14 = vmor %vm356_vm13, %vm357_vm11  ;;  %vm386_vm15 = vweird.f32 %v2934_v53 }
 0x19d   :  { %v349_v8 = vsel %vm348_vm8, %v2344_v46, %v345_v31  ;;  %2347 = vrsqrt.f32 %v263_v35  ;;  %v352_v42 = vmul.f32 %v2346_v34, %v351_v45  ;;  %vm366_vm9 = vweird.f32 %v263_v35 }
 0x19e   :  { %v437_v51 = vmul.f32 %v349_v8, %v2782_v61  ;;  %236 = vadd.xlane.f32.xlu1 %v205_v33  ;;  %2349 = vrsqrt.f32 %v2934_v53 }
 0x19f   :  { %v353_v39 = vmul.f32 0.5, %v352_v42  ;;  %v231_v0 = vpop.xlane.xlu1 %230  ;;  %v2286_v42 = vld [vmem:[#allocation10 + $0x38] sm:$0xff] }
 0x1a0   :  { %v456_v24 = vmul.f32 %v2827_v52, %v437_v51  ;;  %v227_v54 = vpop.xlane.xlu2 %226  ;;  %v250_v5 = vmul.f32 %v231_v0, %v2714_v13  ;;  %1758 = vmatpush.bf16.msrb.mxu0 %v2286_v42  ;;  %v2308_v0 = vld [vmem:[#allocation10 + $0xe8] sm:$0xff] }
 0x1a1   :  { %v248_v55 = vmul.f32 %v227_v54, %v2714_v13  ;;  %v354_v59 = vsub.f32 1.5, %v353_v39  ;;  %v2309_v39 = vld [vmem:[#allocation10 + $0xf0] sm:$0xff] }
 0x1a2   :  { %v475_v56 = vadd.f32 %v2845_v1, %v456_v24  ;;  %v2953_v46 = vadd.f32 1e-06, %v250_v5  ;;  %v2310_v24 = vld [vmem:[#allocation10 + $0xf8] sm:$0xff] }
 0x1a3   :  { %v2348_v61 = vpop.eup %2347  ;;  %v2939_v49 = vadd.f32 1e-06, %v248_v55  ;;  %v355_v3 = vmul.f32 %v2346_v34, %v354_v59  ;;  %1905 = vmatpush.bf16.msrb.mxu3 %v2310_v24  ;;  %v2300_v59 = vld [vmem:[#allocation10 + $0xa8] sm:$0xff] }
 0x1a4   :  { %v361_v17 = vmul.f32 %v2348_v61, %v263_v35  ;;  %v487_v36 = vpack.c.bf16 %v475_v56, %v474_v43  ;;  %vm367_vm10 = vweird.f32 %v2348_v61  ;;  %v2350_v2 = vpop.eup %2349  ;;  %v2301_v56 = vld [vmem:[#allocation10 + $0xb0] sm:$0xff]  ;;  %vm396_vm7 = vweird.f32 %v2953_v46 }
 0x1a5   :  { %2351 = vrsqrt.f32 %v2939_v49  ;;  %vm368_vm12 = vmor %vm366_vm9, %vm367_vm10  ;;  %v381_v6 = vmul.f32 %v2350_v2, %v2934_v53  ;;  %v359_v11 = vsel %vm358_vm14, %v2346_v34, %v355_v3  ;;  %vm387_vm0 = vweird.f32 %v2350_v2  ;;  %v2294_v53 = vld [vmem:[#allocation10 + $0x78] sm:$0xff]  ;;  %v2285_v43 = vld [vmem:[#allocation10 + $0x30] sm:$0xff]  ;;  %1857 = vmatpush.bf16.msrb.mxu2 %v2301_v56 }
 0x1a6   :  { %v362_v57 = vmul.f32 %v2348_v61, %v361_v17  ;;  %717 = vmatmul.bf16.gmra.mxu0 %v487_v36  ;;  %766 = vmatmul.bf16.gmra.mxu1 %v487_v36  ;;  %v438_v16 = vmul.f32 %v359_v11, %v2792_v9  ;;  %vm376_vm1 = vweird.f32 %v2939_v49  ;;  %vm2975_vm3 = vmor %vm386_vm15, %vm387_vm0 }
 0x1a7   :  { %815 = vmatmul.bf16.gmra.mxu2 %v487_v36  ;;  %864 = vmatmul.bf16.gmra.mxu3 %v487_v36  ;;  %v382_v60 = vmul.f32 %v2350_v2, %v381_v6 }
 0x1a8   :  { %v363_v62 = vmul.f32 0.5, %v362_v57  ;;  %v233_v63 = vpop.xlane.xlu2 %232  ;;  %v457_v12 = vmul.f32 %v2827_v52, %v438_v16  ;;  %1807 = vmatpush.bf16.msrb.mxu1 %v2294_v53  ;;  %1759 = vmatpush.bf16.msrb.mxu0 %v2285_v43 }
 0x1a9   :  { %v251_v38 = vmul.f32 %v233_v63, %v2714_v13  ;;  %v383_v18 = vmul.f32 0.5, %v382_v60  ;;  %1906 = vmatpush.bf16.msrb.mxu3 %v2309_v39  ;;  %v2284_v63 = vld [vmem:[#allocation10 + $0x28] sm:$0xff]  ;;  %1858 = vmatpush.bf16.msrb.mxu2 %v2300_v59 }
 0x1aa   :  { %v364_v25 = vsub.f32 1.5, %v363_v62  ;;  %v476_v9 = vadd.f32 %v2845_v1, %v457_v12 }
 0x1ab   :  { %v2944_v32 = vpop.eup %2351  ;;  %v2949_v28 = vadd.f32 1e-06, %v251_v38  ;;  %v384_v22 = vsub.f32 1.5, %v383_v18 }
 0x1ac   :  { %v365_v4 = vmul.f32 %v2348_v61, %v364_v25  ;;  %v371_v15 = vmul.f32 %v2944_v32, %v2939_v49  ;;  %vm377_vm2 = vweird.f32 %v2944_v32  ;;  %v2293_v49 = vld [vmem:[#allocation10 + $0x70] sm:$0xff]  ;;  %1760 = vmatpush.bf16.msrb.mxu0 %v2284_v63 }
 0x1ad   :  { %2353 = vrsqrt.f32 %v2949_v28  ;;  %v385_v31 = vmul.f32 %v2350_v2, %v384_v22  ;;  %vm2981_vm4 = vmor %vm376_vm1, %vm377_vm2  ;;  %1808 = vmatpush.bf16.msrb.mxu1 %v2293_v49  ;;  %vm406_vm5 = vweird.f32 %v2949_v28  ;;  %1907 = vmatpush.bf16.msrb.mxu3 %v2308_v0 }
 0x1ae   :  { %v369_v14 = vsel %vm368_vm12, %v2348_v61, %v365_v4  ;;  %v372_v47 = vmul.f32 %v2944_v32, %v371_v15  ;;  %2355 = vrsqrt.f32 %v2953_v46 }
 0x1af   :  { %v439_v58 = vmul.f32 %v369_v14, %v2822_v41  ;;  %v389_v51 = vsel %vm2975_vm3, %v2350_v2, %v385_v31  ;;  %v235_v18 = vpop.xlane.xlu0 %234 }
 0x1b0   :  { %v373_v20 = vmul.f32 0.5, %v372_v47  ;;  %v441_v61 = vmul.f32 %v389_v51, %v2815_v37  ;;  %v2292_v37 = vld [vmem:[#allocation10 + $0x68] sm:$0xff]  ;;  %v752_v47 = vpop.f32.mrf.mxu1 }
 0x1b1   :  { %v458_v19 = vmul.f32 %v2827_v52, %v439_v58  ;;  %1809 = vmatpush.bf16.msrb.mxu1 %v2292_v37  ;;  %v703_v58 = vpop.f32.mrf.mxu0  ;;  %v801_v12 = vpop.f32.mrf.mxu2 }
 0x1b2   :  { %v374_v26 = vsub.f32 1.5, %v373_v20  ;;  %v460_v62 = vmul.f32 %v2827_v52, %v441_v61 }
 0x1b3   :  { %v2962_v21 = vpop.eup %2353  ;;  %v477_v41 = vadd.f32 %v2845_v1, %v458_v19  ;;  %v524_v19 = vld [vmem:[#allocation8] sm:$0xf] }
 0x1b4   :  { %v2964_v23 = vpop.eup %2355  ;;  %v401_v27 = vmul.f32 %v2962_v21, %v2949_v28  ;;  %v375_v8 = vmul.f32 %v2944_v32, %v374_v26  ;;  %vm407_vm6 = vweird.f32 %v2962_v21  ;;  %v479_v3 = vadd.f32 %v2845_v1, %v460_v62 }
 0x1b5   :  { %v488_v30 = vpack.c.bf16 %v477_v41, %v476_v9  ;;  %v391_v34 = vmul.f32 %v2964_v23, %v2953_v46  ;;  %vm397_vm8 = vweird.f32 %v2964_v23  ;;  %vm408_vm9 = vmor %vm406_vm5, %vm407_vm6  ;;  %v3012_v22 = vperm.slane %v524_v19, 0 }
 0x1b6   :  { %v402_v45 = vmul.f32 %v2962_v21, %v401_v27  ;;  %v379_v54 = vsel %vm2981_vm4, %v2944_v32, %v375_v8  ;;  %vm398_vm10 = vmor %vm396_vm7, %vm397_vm8  ;;  %v3016_v9 = vperm.slane %v524_v19, 1  ;;  %v3018_v41 = vperm.slane %v524_v19, 2 }
 0x1b7   :  { %722 = vmatmul.bf16.gmra.mxu0 %v488_v30  ;;  %771 = vmatmul.bf16.gmra.mxu1 %v488_v30  ;;  %v392_v33 = vmul.f32 %v2964_v23, %v391_v34  ;;  %v440_v36 = vmul.f32 %v379_v54, %v2858_v10  ;;  %v3020_v26 = vperm.slane %v524_v19, 3  ;;  %v3023_v27 = vadd.f32 %v703_v58, %v3012_v22 }
 0x1b8   :  { %820 = vmatmul.bf16.gmra.mxu2 %v488_v30  ;;  %869 = vmatmul.bf16.gmra.mxu3 %v488_v30  ;;  %v403_v55 = vmul.f32 0.5, %v402_v45  ;;  %v3027_v31 = vadd.f32 %v752_v47, %v3016_v9  ;;  %v3030_v35 = vadd.f32 %v801_v12, %v3018_v41 }
 0x1b9   :  { %v393_v17 = vmul.f32 0.5, %v392_v33  ;;  %v459_v25 = vmul.f32 %v2827_v52, %v440_v36  ;;  %v705_v20 = vpop.f32.mrf.mxu0  ;;  %v803_v30 = vpop.f32.mrf.mxu2  ;;  %v890_v50 = vmul.f32 %v3023_v27, %v3023_v27 }
 0x1ba   :  { %v404_v57 = vsub.f32 1.5, %v403_v55  ;;  %v891_v44 = vmul.f32 %v3027_v31, %v3027_v31  ;;  %v892_v42 = vmul.f32 %v3030_v35, %v3030_v35  ;;  %v3047_v54 = vadd.f32 %v705_v20, %v3012_v22 }
 0x1bb   :  { %v394_v2 = vsub.f32 1.5, %v393_v17  ;;  %v478_v38 = vadd.f32 %v2845_v1, %v459_v25  ;;  %v954_v53 = vmul.f32 %v890_v50, %v3023_v27  ;;  %v3058_v17 = vadd.f32 %v803_v30, %v3018_v41 }
 0x1bc   :  { %v405_v10 = vmul.f32 %v2962_v21, %v404_v57  ;;  %v955_v43 = vmul.f32 %v891_v44, %v3027_v31  ;;  %v956_v39 = vmul.f32 %v892_v42, %v3030_v35  ;;  %v894_v57 = vmul.f32 %v3047_v54, %v3047_v54 }
 0x1bd   :  { %v395_v32 = vmul.f32 %v2964_v23, %v394_v2  ;;  %v489_v4 = vpack.c.bf16 %v479_v3, %v478_v38  ;;  %v1018_v36 = vmul.f32 0.044715, %v954_v53  ;;  %v896_v3 = vmul.f32 %v3058_v17, %v3058_v17 }
 0x1be   :  { %v409_v5 = vsel %vm408_vm9, %v2962_v21, %v405_v10  ;;  %v754_v21 = vpop.f32.mrf.mxu1  ;;  %v1019_v37 = vmul.f32 0.044715, %v955_v43  ;;  %v1020_v10 = vmul.f32 0.044715, %v956_v39  ;;  %v2299_v43 = vld [vmem:[#allocation10 + $0xa0] sm:$0xff] }
 0x1bf   :  { %v399_v6 = vsel %vm398_vm10, %v2964_v23, %v395_v32  ;;  %v443_v28 = vmul.f32 %v409_v5, %v2888_v29  ;;  %v850_v29 = vpop.f32.mrf.mxu3  ;;  %v3052_v56 = vadd.f32 %v754_v21, %v3016_v9  ;;  %v1082_v32 = vadd.f32 %v1018_v36, %v3023_v27  ;;  %v2307_v39 = vld [vmem:[#allocation10 + $0xe0] sm:$0xff]  ;;  %1859 = vmatpush.bf16.msrb.mxu2 %v2299_v43 }
 0x1c0   :  { %v442_v11 = vmul.f32 %v399_v6, %v2852_v7  ;;  %v252_v7 = vmul.f32 %v235_v18, %v2714_v13  ;;  %v3033_v8 = vadd.f32 %v850_v29, %v3020_v26  ;;  %1908 = vmatpush.bf16.msrb.mxu3 %v2307_v39  ;;  %v2282_v39 = vld [vmem:[#allocation10 + $0x18] sm:$0xff] }
 0x1c1   :  { %v462_v14 = vmul.f32 %v2827_v52, %v443_v28  ;;  %v708_v45 = vpop.f32.mrf.mxu0  ;;  %v806_v61 = vpop.f32.mrf.mxu2  ;;  %v895_v0 = vmul.f32 %v3052_v56, %v3052_v56 }
 0x1c2   :  { %v461_v15 = vmul.f32 %v2827_v52, %v442_v11  ;;  %v3014_v23 = vadd.f32 1e-06, %v252_v7  ;;  %v893_v24 = vmul.f32 %v3033_v8, %v3033_v8  ;;  %v3076_v11 = vadd.f32 %v708_v45, %v3012_v22 }
 0x1c3   :  { %v481_v46 = vadd.f32 %v2845_v1, %v462_v14  ;;  %v959_v28 = vmul.f32 %v895_v0, %v3052_v56  ;;  %v1083_v14 = vadd.f32 %v1019_v37, %v3027_v31  ;;  %v3089_v20 = vadd.f32 %v806_v61, %v3018_v41  ;;  %v2283_v61 = vld [vmem:[#allocation10 + $0x20] sm:$0xff] }
 0x1c4   :  { %v480_v60 = vadd.f32 %v2845_v1, %v461_v15  ;;  %2357 = vrsqrt.f32 %v3014_v23  ;;  %v957_v49 = vmul.f32 %v893_v24, %v3033_v8  ;;  %v1084_v15 = vadd.f32 %v1020_v10, %v3030_v35  ;;  %1761 = vmatpush.bf16.msrb.mxu0 %v2283_v61 }
 0x1c5   :  { %v1023_v7 = vmul.f32 0.044715, %v959_v28  ;;  %v898_v19 = vmul.f32 %v3076_v11, %v3076_v11  ;;  %3820 = vst [vmem:[#allocation16_spill] sm:$0xff] %v3089_v20  ;;  %v1147_v21 = vmul.f32 0.7978846, %v1083_v14  ;;  %vm416_vm11 = vweird.f32 %v3014_v23 }
 0x1c6   :  { %v490_v16 = vpack.c.bf16 %v481_v46, %v480_v60  ;;  %v757_v51 = vpop.f32.mrf.mxu1  ;;  %v1021_v38 = vmul.f32 0.044715, %v957_v49  ;;  %v960_v60 = vmul.f32 %v896_v3, %v3058_v17  ;;  %v1148_v45 = vmul.f32 0.7978846, %v1084_v15  ;;  %v2298_v3 = vld [vmem:[#allocation10 + $0x98] sm:$0xff] }
 0x1c7   :  { %727 = vmatmul.bf16.gmra.mxu0 %v489_v4  ;;  %776 = vmatmul.bf16.gmra.mxu1 %v489_v4  ;;  %v852_v34 = vpop.f32.mrf.mxu3  ;;  %v3084_v18 = vadd.f32 %v757_v51, %v3016_v9  ;;  %v1087_v36 = vadd.f32 %v1023_v7, %v3052_v56 }
 0x1c8   :  { %825 = vmatmul.bf16.gmra.mxu2 %v489_v4  ;;  %874 = vmatmul.bf16.gmra.mxu3 %v489_v4  ;;  %v3063_v59 = vadd.f32 %v852_v34, %v3020_v26  ;;  %v958_v4 = vmul.f32 %v894_v57, %v3047_v54  ;;  %v1085_v46 = vadd.f32 %v1021_v38, %v3033_v8  ;;  %v1024_v51 = vmul.f32 0.044715, %v960_v60 }
 0x1c9   :  { %v710_v2 = vpop.f32.mrf.mxu0  ;;  %v808_v12 = vpop.f32.mrf.mxu2  ;;  %v899_v53 = vmul.f32 %v3084_v18, %v3084_v18  ;;  %v962_v57 = vmul.f32 %v898_v19, %v3076_v11  ;;  %1860 = vmatpush.bf16.msrb.mxu2 %v2298_v3  ;;  %1762 = vmatpush.bf16.msrb.mxu0 %v2282_v39 }
 0x1ca   :  { %v3037_v33 = vpop.eup %2357  ;;  %v897_v5 = vmul.f32 %v3063_v59, %v3063_v59  ;;  %v1022_v58 = vmul.f32 0.044715, %v958_v4  ;;  %v1149_v50 = vmul.f32 0.7978846, %v1085_v46  ;;  %v3115_v10 = vadd.f32 %v710_v2, %v3012_v22 }
 0x1cb   :  { %v411_v55 = vmul.f32 %v3037_v33, %v3014_v23  ;;  %vm417_vm12 = vweird.f32 %v3037_v33  ;;  %v1026_v14 = vmul.f32 0.044715, %v962_v57 }
 0x1cc   :  { %v961_v47 = vmul.f32 %v897_v5, %v3063_v59  ;;  %v1086_v42 = vadd.f32 %v1022_v58, %v3047_v54  ;;  %vm3108_vm13 = vmor %vm416_vm11, %vm417_vm12  ;;  %v963_v5 = vmul.f32 %v899_v53, %v3084_v18  ;;  %v902_v58 = vmul.f32 %v3115_v10, %v3115_v10 }
 0x1cd   :  { %v412_v63 = vmul.f32 %v3037_v33, %v411_v55 }
 0x1ce   :  { %v759_v25 = vpop.f32.mrf.mxu1  ;;  %v1025_v24 = vmul.f32 0.044715, %v961_v47  ;;  %v1150_v60 = vmul.f32 0.7978846, %v1086_v42 }
 0x1cf   :  { %v855_v62 = vpop.f32.mrf.mxu3  ;;  %v413_v6 = vmul.f32 0.5, %v412_v63  ;;  %v2291_v63 = vld [vmem:[#allocation10 + $0x60] sm:$0xff]  ;;  %v3122_v23 = vadd.f32 %v759_v25, %v3016_v9 }
 0x1d0   :  { %v3093_v30 = vadd.f32 %v855_v62, %v3020_v26  ;;  %v900_v62 = vmul.f32 %v3089_v20, %v3089_v20  ;;  %1810 = vmatpush.bf16.msrb.mxu1 %v2291_v63  ;;  %v1089_v2 = vadd.f32 %v1025_v24, %v3063_v59  ;;  %v3156_v24 = vadd.f32 %v1026_v14, %v3076_v11 }
 0x1d1   :  { %v414_v29 = vsub.f32 1.5, %v413_v6  ;;  %v713_v44 = vpop.f32.mrf.mxu0  ;;  %v3130_v6 = vadd.f32 %v808_v12, %v3018_v41  ;;  %v811_v12 = vpop.f32.mrf.mxu2  ;;  %v903_v7 = vmul.f32 %v3122_v23, %v3122_v23  ;;  %v966_v63 = vmul.f32 %v902_v58, %v3115_v10 }
 0x1d2   :  { %3821 = vst [vmem:[#allocation17_spill] sm:$0xff] %v3093_v30  ;;  %v901_v37 = vmul.f32 %v3093_v30, %v3093_v30  ;;  %v3118_v38 = vadd.f32 %v713_v44, %v3012_v22  ;;  %v964_v25 = vmul.f32 %v900_v62, %v3089_v20  ;;  %v3161_v43 = vadd.f32 %v811_v12, %v3018_v41 }
 0x1d3   :  { %v415_v49 = vmul.f32 %v3037_v33, %v414_v29  ;;  %v1151_v29 = vmul.f32 0.7978846, %v1087_v36  ;;  %v2290_v36 = vld [vmem:[#allocation10 + $0x58] sm:$0xff]  ;;  %v967_v3 = vmul.f32 %v903_v7, %v3122_v23 }
 0x1d4   :  { %3824 = vst [vmem:[#allocation18_spill] sm:$0xff] %v3118_v38  ;;  %v906_v47 = vmul.f32 %v3118_v38, %v3118_v38  ;;  %v1028_v53 = vmul.f32 0.044715, %v964_v25  ;;  %1811 = vmatpush.bf16.msrb.mxu1 %v2290_v36 }
 0x1d5   :  { %v419_v28 = vsel %vm3108_vm13, %v3037_v33, %v415_v49  ;;  %v2306_v49 = vld [vmem:[#allocation10 + $0xd8] sm:$0xff] }
 0x1d6   :  { %v762_v55 = vpop.f32.mrf.mxu1  ;;  %v970_v0 = vmul.f32 %v906_v47, %v3118_v38  ;;  %1909 = vmatpush.bf16.msrb.mxu3 %v2306_v49 }
 0x1d7   :  { %732 = vmatmul.bf16.gmra.mxu0 %v490_v16  ;;  %781 = vmatmul.bf16.gmra.mxu1 %v490_v16  ;;  %v857_v34 = vpop.f32.mrf.mxu3  ;;  %v3125_v4 = vadd.f32 %v762_v55, %v3016_v9 }
 0x1d8   :  { %830 = vmatmul.bf16.gmra.mxu2 %v490_v16  ;;  %879 = vmatmul.bf16.gmra.mxu3 %v490_v16  ;;  %v1146_v16 = vmul.f32 0.7978846, %v1082_v32  ;;  %v1088_v32 = vadd.f32 %v1024_v51, %v3058_v17  ;;  %v3137_v15 = vadd.f32 %v857_v34, %v3020_v26  ;;  %v444_v34 = vmul.f32 %v419_v28, %v2898_v48 }
 0x1d9   :  { %3825 = vst [vmem:[#allocation19_spill] sm:$0xff] %v3125_v4  ;;  %v907_v19 = vmul.f32 %v3125_v4, %v3125_v4  ;;  %v904_v51 = vmul.f32 %v3130_v6, %v3130_v6  ;;  %v715_v61 = vpop.f32.mrf.mxu0  ;;  %v1034_v47 = vmul.f32 0.044715, %v970_v0 }
 0x1da   :  { %2359 = vtanh.f32 %v1146_v16  ;;  %v965_v16 = vmul.f32 %v901_v37, %v3093_v30  ;;  %v1152_v33 = vmul.f32 0.7978846, %v1088_v32  ;;  %v905_v55 = vmul.f32 %v3137_v15, %v3137_v15 }
 0x1db   :  { %2361 = vtanh.f32 %v1147_v21  ;;  %v971_v32 = vmul.f32 %v907_v19, %v3125_v4  ;;  %v968_v28 = vmul.f32 %v904_v51, %v3130_v6  ;;  %v3175_v14 = vadd.f32 %v715_v61, %v3012_v22 }
 0x1dc   :  { %2363 = vtanh.f32 %v1148_v45  ;;  %v1153_v45 = vmul.f32 0.7978846, %v1089_v2  ;;  %v1029_v62 = vmul.f32 0.044715, %v965_v16  ;;  %v908_v16 = vmul.f32 %v3161_v43, %v3161_v43 }
 0x1dd   :  { %2365 = vtanh.f32 %v1149_v50  ;;  %v1027_v50 = vmul.f32 0.044715, %v963_v5  ;;  %v1030_v19 = vmul.f32 0.044715, %v966_v63 }
 0x1de   :  { %v764_v5 = vpop.f32.mrf.mxu1  ;;  %2367 = vtanh.f32 %v1150_v60  ;;  %v463_v60 = vmul.f32 %v2827_v52, %v444_v34  ;;  %v1032_v52 = vmul.f32 0.044715, %v968_v28  ;;  %v972_v34 = vmul.f32 %v908_v16, %v3161_v43 }
 0x1df   :  { %v860_v44 = vpop.f32.mrf.mxu3  ;;  %2369 = vtanh.f32 %v1151_v29  ;;  %v3183_v12 = vadd.f32 %v764_v5, %v3016_v9  ;;  %v3188_v7 = vadd.f32 %v1027_v50, %v3084_v18  ;;  %v1035_v29 = vmul.f32 0.044715, %v971_v32  ;;  %v813_v50 = vpop.f32.mrf.mxu2 }
 0x1e0   :  { %v2360_v46 = vpop.eup %2359  ;;  %v3171_v2 = vadd.f32 %v860_v44, %v3020_v26  ;;  %2371 = vtanh.f32 %v1152_v33  ;;  %v3193_v44 = vadd.f32 %v1028_v53, %v3089_v20  ;;  %v1031_v33 = vmul.f32 0.044715, %v967_v3 }
 0x1e1   :  { %v3148_v21 = vpop.eup %2361  ;;  %v1274_v58 = vadd.f32 1.0, %v2360_v46  ;;  %v3196_v46 = vadd.f32 %v1029_v62, %v3093_v30  ;;  %v3204_v53 = vadd.f32 %v1034_v47, %v3118_v38  ;;  %v911_v36 = vmul.f32 %v3183_v12, %v3183_v12 }
 0x1e2   :  { %v3153_v42 = vpop.eup %2363  ;;  %v909_v51 = vmul.f32 %v3171_v2, %v3171_v2  ;;  %v3209_v63 = vadd.f32 %v2845_v1, %v463_v60  ;;  %v1094_v32 = vadd.f32 %v1030_v19, %v3115_v10 }
 0x1e3   :  { %v3163_v57 = vpop.eup %2365  ;;  %v1276_v1 = vadd.f32 1.0, %v3153_v42 }
 0x1e4   :  { %v2368_v61 = vpop.eup %2367  ;;  %v973_v3 = vmul.f32 %v909_v51, %v3171_v2  ;;  %v1158_v42 = vmul.f32 0.7978846, %v1094_v32 }
 0x1e5   :  { %v2370_v39 = vpop.eup %2369  ;;  %v1278_v16 = vadd.f32 1.0, %v2368_v61  ;;  %v1340_v20 = vmul.f32 0.5, %v1276_v1 }
 0x1e6   :  { %v2372_v0 = vpop.eup %2371  ;;  %v1279_v19 = vadd.f32 1.0, %v2370_v39 }
 0x1e7   :  { %v862_v62 = vpop.f32.mrf.mxu3  ;;  %v1280_v51 = vadd.f32 1.0, %v2372_v0  ;;  %v1342_v30 = vmul.f32 0.5, %v1278_v16 }
 0x1e8   :  { %v3223_v47 = vadd.f32 %v862_v62, %v3020_v26  ;;  %v1343_v0 = vmul.f32 0.5, %v1279_v19 }
 0x211   :  { %v237_v48 = vpop.xlane.xlu1 %236 }
 0x212   :  { %v253_v37 = vmul.f32 %v237_v48, %v2714_v13  ;;  %v969_v13 = vmul.f32 %v905_v55, %v3137_v15  ;;  %v910_v55 = vmul.f32 %v3175_v14, %v3175_v14  ;;  %v1338_v48 = vmul.f32 0.5, %v1274_v58 }
 0x213   :  { %v1036_v58 = vmul.f32 0.044715, %v972_v34 }
 0x214   :  { %v3177_v25 = vadd.f32 1e-06, %v253_v37  ;;  %v3201_v49 = vmul.f32 0.044715, %v969_v13  ;;  %v3212_v37 = vadd.f32 %v1035_v29, %v3125_v4  ;;  %v974_v28 = vmul.f32 %v910_v55, %v3175_v14 }
 0x215   :  { %v3219_v13 = vadd.f32 %v813_v50, %v3018_v41  ;;  %v3227_v29 = vmul.f32 %v1338_v48, %v3023_v27  ;;  %v1154_v55 = vmul.f32 0.7978846, %v3156_v24  ;;  %v1037_v4 = vmul.f32 0.044715, %v973_v3 }
 0x216   :  { %2373 = vrsqrt.f32 %v3177_v25  ;;  %v1038_v34 = vmul.f32 0.044715, %v974_v28  ;;  %v3234_v27 = vadd.f32 %v1036_v58, %v3161_v43  ;;  %v913_v48 = vmul.f32 %v3223_v47, %v3223_v47 }
 0x217   :  { %2375 = vtanh.f32 %v1153_v45  ;;  %v1275_v45 = vadd.f32 1.0, %v3148_v21  ;;  %v975_v21 = vmul.f32 %v911_v36, %v3183_v12  ;;  %v912_v62 = vmul.f32 %v3219_v13, %v3219_v13 }
 0x218   :  { %v1277_v24 = vadd.f32 1.0, %v3163_v57  ;;  %v1344_v3 = vmul.f32 0.5, %v1280_v51  ;;  %2377 = vtanh.f32 %v1154_v55  ;;  %v1095_v28 = vadd.f32 %v1031_v33, %v3122_v23 }
 0x219   :  { %v1339_v38 = vmul.f32 0.5, %v1275_v45  ;;  %2379 = vtanh.f32 %v1158_v42  ;;  %v1039_v16 = vmul.f32 0.044715, %v975_v21  ;;  %v976_v1 = vmul.f32 %v912_v62, %v3219_v13 }
 0x21a   :  { %v3242_v58 = vmul.f32 %v1342_v30, %v3047_v54  ;;  %vm426_vm15 = vweird.f32 %v3177_v25  ;;  %v1341_v19 = vmul.f32 0.5, %v1277_v24  ;;  %v1096_v51 = vadd.f32 %v1032_v52, %v3130_v6 }
 0x21b   :  { %v3248_v55 = vadd.f32 %v1037_v4, %v3171_v2  ;;  %v977_v33 = vmul.f32 %v913_v48, %v3223_v47  ;;  %v3252_v21 = vmul.f32 %v1339_v38, %v3027_v31  ;;  %v3255_v54 = vmul.f32 %v1343_v0, %v3052_v56  ;;  %v2305_v48 = vld [vmem:[#allocation10 + $0xd0] sm:$0xff] }
 0x21c   :  { %v2374_v5 = vpop.eup %2373  ;;  %v3258_v42 = vmul.f32 %v1344_v3, %v3058_v17  ;;  %v1159_v62 = vmul.f32 0.7978846, %v1095_v28  ;;  %v1466_v31 = vpack.c.bf16 %v3242_v58, %v3227_v29  ;;  %v3264_v38 = vmul.f32 %v1340_v20, %v3030_v35  ;;  %1910 = vmatpush.bf16.msrb.mxu3 %v2305_v48 }
 0x21d   :  { %v421_v60 = vmul.f32 %v2374_v5, %v3177_v25  ;;  %v2376_v50 = vpop.eup %2375  ;;  %vm427_vm14 = vweird.f32 %v2374_v5  ;;  %v2297_v25 = vld [vmem:[#allocation10 + $0x90] sm:$0xff]  ;;  %v3267_v17 = vmul.f32 %v1341_v19, %v3033_v8  ;;  %v1160_v24 = vmul.f32 0.7978846, %v1096_v51  ;;  %v2490_v51 = vld [vmem:[%s3800_s2] ss:$0 sm:$0xff] }
 0x21e   :  { %v1281_v45 = vadd.f32 1.0, %v2376_v50  ;;  %vm428_vm0 = vmor %vm426_vm15, %vm427_vm14  ;;  %v2289_v50 = vld [vmem:[#allocation10 + $0x50] sm:$0xff]  ;;  %v2378_v4 = vpop.eup %2377  ;;  %v1097_v0 = vadd.f32 %v3201_v49, %v3137_v15  ;;  %1861 = vmatpush.bf16.msrb.mxu2 %v2297_v25  ;;  %v1467_v3 = vpack.c.bf16 %v3255_v54, %v3252_v21  ;;  %v1156_v35 = vmul.f32 0.7978846, %v3193_v44 }
 0x21f   :  { %v422_v61 = vmul.f32 %v2374_v5, %v421_v60  ;;  %v1155_v60 = vmul.f32 0.7978846, %v3188_v7  ;;  %v2281_v7 = vld [vmem:[#allocation10 + $0x10] sm:$0xff]  ;;  %v2380_v56 = vpop.eup %2379  ;;  %1812 = vmatpush.bf16.msrb.mxu1 %v2289_v50  ;;  %v1102_v20 = vadd.f32 %v1038_v34, %v3175_v14  ;;  %v1468_v8 = vpack.c.bf16 %v3258_v42, %v3264_v38 }
 0x220   :  { %v1345_v52 = vmul.f32 0.5, %v1281_v45  ;;  %1763 = vmatpush.bf16.msrb.mxu0 %v2281_v7  ;;  %v1282_v44 = vadd.f32 1.0, %v2378_v4  ;;  %v1286_v19 = vadd.f32 1.0, %v2380_v56  ;;  %v1157_v34 = vmul.f32 0.7978846, %v3196_v46  ;;  %v2288_v7 = vld [vmem:[#allocation10 + $0x48] sm:$0xff] }
 0x221   :  { %v423_v39 = vmul.f32 0.5, %v422_v61  ;;  %2381 = vtanh.f32 %v1155_v60  ;;  %v1161_v50 = vmul.f32 0.7978846, %v1097_v0  ;;  %v1162_v46 = vmul.f32 0.7978846, %v3204_v53  ;;  %v2279_v0 = vld [vmem:[#allocation10] sm:$0xff] }
 0x222   :  { %2383 = vtanh.f32 %v1159_v62  ;;  %v2304_v62 = vld [vmem:[#allocation10 + $0xc8] sm:$0xff]  ;;  %v1166_v4 = vmul.f32 0.7978846, %v1102_v20  ;;  %v2287_v53 = vld [vmem:[#allocation10 + $0x40] sm:$0xff]  ;;  %v1350_v20 = vmul.f32 0.5, %v1286_v19 }
 0x223   :  { %v718_v36 = vpop.f32.mrf.mxu0  ;;  %v424_v32 = vsub.f32 1.5, %v423_v39  ;;  %v767_v57 = vpop.f32.mrf.mxu1  ;;  %2385 = vtanh.f32 %v1160_v24  ;;  %1813 = vmatpush.bf16.msrb.mxu1 %v2288_v7  ;;  %v1163_v24 = vmul.f32 0.7978846, %v3212_v37  ;;  %1911 = vmatpush.bf16.msrb.mxu3 %v2304_v62  ;;  %v2303_v37 = vld [vmem:[#allocation10 + $0xc0] sm:$0xff] }
 0x224   :  { %v3283_v49 = vadd.f32 %v718_v36, %v3012_v22  ;;  %v1103_v36 = vadd.f32 %v1039_v16, %v3183_v12  ;;  %2387 = vtanh.f32 %v1156_v35  ;;  %v1346_v35 = vmul.f32 0.5, %v1282_v44 }
 0x225   :  { %v425_v61 = vmul.f32 %v2374_v5, %v424_v32  ;;  %v2489_v32 = vld [vmem:[#allocation5] ss:$0 sm:$0xff]  ;;  %2389 = vtanh.f32 %v1157_v34 }
 0x226   :  { %2391 = vtanh.f32 %v1161_v50  ;;  %v3321_v50 = vmul.f32 %v1346_v35, %v3076_v11 }
 0x227   :  { %v429_v30 = vsel %vm428_vm0, %v2374_v5, %v425_v61  ;;  %v1040_v5 = vmul.f32 0.044715, %v976_v1  ;;  %v3280_v1 = vmul.f32 %v1345_v52, %v3063_v59  ;;  %v2296_v59 = vld [vmem:[#allocation10 + $0x88] sm:$0xff]  ;;  %v2382_v25 = vpop.eup %2381  ;;  %v3293_v52 = vadd.f32 %v767_v57, %v3016_v9  ;;  %1814 = vmatpush.bf16.msrb.mxu1 %v2287_v53  ;;  %1912 = vmatpush.bf16.msrb.mxu3 %v2303_v37 }
 0x228   :  { %v445_v39 = vmul.f32 %v429_v30, %v2925_v40  ;;  %v3271_v40 = vmul.f32 0.044715, %v977_v33  ;;  %v2280_v30 = vld [vmem:[#allocation10 + $0x8] sm:$0xff]  ;;  %v914_v57 = vmul.f32 %v3283_v49, %v3283_v49  ;;  %1862 = vmatpush.bf16.msrb.mxu2 %v2296_v59  ;;  %2393 = vtanh.f32 %v1162_v46 }
 0x229   :  { %1764 = vmatpush.bf16.msrb.mxu0 %v2280_v30  ;;  %v1104_v16 = vadd.f32 %v1040_v5, %v3219_v13  ;;  %v1469_v5 = vpack.c.bf16 %v3280_v1, %v3267_v17  ;;  %2395 = vtanh.f32 %v1166_v4 }
 0x22a   :  { %v816_v45 = vpop.f32.mrf.mxu2  ;;  %v464_v28 = vmul.f32 %v2489_v32, %v445_v39  ;;  %v3285_v60 = vpop.f32.mrf.mxu3  ;;  %v1105_v7 = vadd.f32 %v3271_v40, %v3223_v47  ;;  %2397 = vtanh.f32 %v1163_v24 }
 0x22b   :  { %v720_v61 = vpop.f32.mrf.mxu0  ;;  %v769_v48 = vpop.f32.mrf.mxu1  ;;  %v1168_v30 = vmul.f32 0.7978846, %v1104_v16  ;;  %v3332_v16 = vadd.f32 %v3285_v60, %v3020_v26 }
 0x22c   :  { %v483_v33 = vadd.f32 %v2490_v51, %v464_v28  ;;  %v3297_v39 = vadd.f32 %v720_v61, %v3012_v22  ;;  %v2384_v32 = vpop.eup %2383  ;;  %v3305_v28 = vadd.f32 %v816_v45, %v3018_v41  ;;  %v1283_v61 = vadd.f32 1.0, %v2382_v25 }
 0x22d   :  { %v1167_v51 = vmul.f32 0.7978846, %v1103_v36  ;;  %v3312_v44 = vadd.f32 %v769_v48, %v3016_v9  ;;  %v1164_v45 = vmul.f32 0.7978846, %v3234_v27  ;;  %v2386_v19 = vpop.eup %2385  ;;  %1765 = vmatpush.bf16.msrb.mxu0 %v2279_v0  ;;  %v978_v36 = vmul.f32 %v914_v57, %v3283_v49 }
 0x22e   :  { %v491_v56 = vpack.c.bf16 %v483_v33, %v3209_v63  ;;  %v2295_v63 = vld [vmem:[#allocation10 + $0x80] sm:$0xff]  ;;  %v915_v33 = vmul.f32 %v3293_v52, %v3293_v52  ;;  %v918_v34 = vmul.f32 %v3297_v39, %v3297_v39  ;;  %v2388_v59 = vpop.eup %2387  ;;  %v3324_v27 = vmul.f32 %v1350_v20, %v3115_v10 }
 0x22f   :  { %1863 = vmatpush.bf16.msrb.mxu2 %v2295_v63  ;;  %v1287_v25 = vadd.f32 1.0, %v2384_v32  ;;  %v916_v62 = vmul.f32 %v3305_v28, %v3305_v28  ;;  %v1347_v46 = vmul.f32 0.5, %v1283_v61  ;;  %v1165_v48 = vmul.f32 0.7978846, %v3248_v55  ;;  %v2390_v40 = vpop.eup %2389 }
 0x230   :  { %737 = vmatmul.bf16.gmra.mxu0 %v491_v56  ;;  %786 = vmatmul.bf16.gmra.mxu1 %v491_v56  ;;  %v919_v11 = vmul.f32 %v3312_v44, %v3312_v44  ;;  %v1288_v0 = vadd.f32 1.0, %v2386_v19  ;;  %v982_v53 = vmul.f32 %v918_v34, %v3297_v39  ;;  %v1284_v35 = vadd.f32 1.0, %v2388_v59  ;;  %v2392_v20 = vpop.eup %2391 }
 0x231   :  { %835 = vmatmul.bf16.gmra.mxu2 %v491_v56  ;;  %884 = vmatmul.bf16.gmra.mxu3 %v491_v56  ;;  %v979_v56 = vmul.f32 %v915_v33, %v3293_v52  ;;  %v1169_v4 = vmul.f32 0.7978846, %v1105_v7  ;;  %v1042_v55 = vmul.f32 0.044715, %v978_v36  ;;  %v1351_v63 = vmul.f32 0.5, %v1287_v25  ;;  %v2394_v60 = vpop.eup %2393 }
 0x232   :  { %v818_v10 = vpop.f32.mrf.mxu2  ;;  %v867_v57 = vpop.f32.mrf.mxu3  ;;  %2399 = vtanh.f32 %v1167_v51  ;;  %v980_v37 = vmul.f32 %v916_v62, %v3305_v28  ;;  %v3341_v61 = vmul.f32 %v1347_v46, %v3084_v18  ;;  %v1285_v33 = vadd.f32 1.0, %v2390_v40 }
 0x233   :  { %2401 = vtanh.f32 %v1164_v45  ;;  %v1043_v19 = vmul.f32 0.044715, %v979_v56  ;;  %v917_v24 = vmul.f32 %v3332_v16, %v3332_v16  ;;  %v983_v34 = vmul.f32 %v919_v11, %v3312_v44  ;;  %v2396_v59 = vpop.eup %2395 }
 0x234   :  { %v1352_v7 = vmul.f32 0.5, %v1288_v0  ;;  %v1046_v36 = vmul.f32 0.044715, %v982_v53  ;;  %v1348_v32 = vmul.f32 0.5, %v1284_v35  ;;  %v1289_v25 = vadd.f32 1.0, %v2392_v20  ;;  %v723_v18 = vpop.f32.mrf.mxu0  ;;  %v2398_v45 = vpop.eup %2397 }
 0x235   :  { %2403 = vtanh.f32 %v1168_v30  ;;  %v1106_v51 = vadd.f32 %v1042_v55, %v3283_v49  ;;  %v3348_v62 = vadd.f32 %v818_v10, %v3018_v41  ;;  %v1290_v46 = vadd.f32 1.0, %v2394_v60  ;;  %v3350_v56 = vpop.f32.mrf.mxu1  ;;  %v3826_v60 = vld [vmem:[#allocation16_spill] sm:$0xff] }
 0x236   :  { %2405 = vtanh.f32 %v1165_v48  ;;  %v1044_v40 = vmul.f32 0.044715, %v980_v37  ;;  %v3353_v11 = vmul.f32 %v1351_v63, %v3122_v23  ;;  %v1349_v0 = vmul.f32 0.5, %v1285_v33 }
 0x237   :  { %2407 = vtanh.f32 %v1169_v4  ;;  %v1107_v30 = vadd.f32 %v1043_v19, %v3293_v52  ;;  %v981_v35 = vmul.f32 %v917_v24, %v3332_v16  ;;  %v1047_v20 = vmul.f32 0.044715, %v983_v34 }
 0x238   :  { %v2400_v53 = vpop.eup %2399  ;;  %v3358_v10 = vmul.f32 %v1352_v7, %v3130_v6  ;;  %v3361_v48 = vadd.f32 %v867_v57, %v3020_v26  ;;  %v3364_v37 = vmul.f32 %v1348_v32, %v3826_v60  ;;  %v1353_v23 = vmul.f32 0.5, %v1289_v25 }
 0x239   :  { %v2402_v55 = vpop.eup %2401  ;;  %v1110_v63 = vadd.f32 %v1046_v36, %v3297_v39  ;;  %v920_v4 = vmul.f32 %v3348_v62, %v3348_v62  ;;  %v1294_v24 = vadd.f32 1.0, %v2396_v59  ;;  %v1354_v6 = vmul.f32 0.5, %v1290_v46  ;;  %v3827_v36 = vld [vmem:[#allocation17_spill] sm:$0xff] }
 0x23a   :  { %v1170_v34 = vmul.f32 0.7978846, %v1106_v51  ;;  %v1108_v57 = vadd.f32 %v1044_v40, %v3305_v28  ;;  %v1471_v32 = vpack.c.bf16 %v3353_v11, %v3341_v61  ;;  %v3383_v25 = vmul.f32 %v1349_v0, %v3827_v36  ;;  %v3828_v40 = vld [vmem:[#allocation18_spill] sm:$0xff] }
 0x23b   :  { %v3369_v33 = vpop.f32.mrf.mxu2  ;;  %v3371_v19 = vpop.f32.mrf.mxu3  ;;  %v1291_v59 = vadd.f32 1.0, %v2398_v45  ;;  %v1045_v51 = vmul.f32 0.044715, %v981_v35  ;;  %v1472_v29 = vpack.c.bf16 %v3358_v10, %v3364_v37  ;;  %v1111_v58 = vadd.f32 %v1047_v20, %v3312_v44 }
 0x23c   :  { %v2404_v7 = vpop.eup %2403  ;;  %v1171_v21 = vmul.f32 0.7978846, %v1107_v30  ;;  %v1295_v45 = vadd.f32 1.0, %v2400_v53  ;;  %v1174_v42 = vmul.f32 0.7978846, %v1110_v63  ;;  %v984_v38 = vmul.f32 %v920_v4, %v3348_v62  ;;  %v725_v1 = vpop.f32.mrf.mxu0 }
 0x23d   :  { %v2406_v46 = vpop.eup %2405  ;;  %v3401_v0 = vmul.f32 %v1354_v6, %v3828_v40  ;;  %2409 = vtanh.f32 %v1170_v34  ;;  %v3404_v30 = vadd.f32 %v723_v18, %v3012_v22  ;;  %v1355_v35 = vmul.f32 0.5, %v1291_v59 }
 0x23e   :  { %v2408_v54 = vpop.eup %2407  ;;  %v1296_v20 = vadd.f32 1.0, %v2404_v7  ;;  %v1172_v60 = vmul.f32 0.7978846, %v1108_v57  ;;  %v1109_v17 = vadd.f32 %v1045_v51, %v3332_v16  ;;  %2411 = vtanh.f32 %v1171_v21 }
 0x23f   :  { %v1359_v63 = vmul.f32 0.5, %v1295_v45  ;;  %v1297_v4 = vadd.f32 1.0, %v2408_v54  ;;  %2413 = vtanh.f32 %v1174_v42  ;;  %v1293_v7 = vadd.f32 1.0, %v2406_v46  ;;  %v3829_v54 = vld [vmem:[#allocation19_spill] sm:$0xff] }
 0x240   :  { %1766 = vmatmul.bf16.vlgmr.msrb.gmra.mxu0 %v1466_v31  ;;  %1815 = vmatmul.bf16.vlgmr.msrb.gmra.mxu1 %v1467_v3  ;;  %v921_v31 = vmul.f32 %v3361_v48, %v3361_v48  ;;  %v3397_v3 = vmul.f32 %v1353_v23, %v3137_v15  ;;  %v1292_v15 = vadd.f32 1.0, %v2402_v55  ;;  %v774_v23 = vpop.f32.mrf.mxu1  ;;  %v922_v55 = vmul.f32 %v3404_v30, %v3404_v30 }
 0x241   :  { %1864 = vmatmul.bf16.vlgmr.msrb.gmra.mxu2 %v1468_v8  ;;  %1913 = vmatmul.bf16.vlgmr.msrb.gmra.mxu3 %v1469_v5  ;;  %v1358_v8 = vmul.f32 0.5, %v1294_v24  ;;  %v1175_v5 = vmul.f32 0.7978846, %v1111_v58  ;;  %v1048_v24 = vmul.f32 0.044715, %v984_v38  ;;  %v3417_v57 = vadd.f32 %v3350_v56, %v3016_v9 }
 0x242   :  { %v985_v53 = vmul.f32 %v921_v31, %v3361_v48  ;;  %v1473_v18 = vpack.c.bf16 %v3397_v3, %v3383_v25  ;;  %v1360_v59 = vmul.f32 0.5, %v1296_v20  ;;  %2415 = vtanh.f32 %v1172_v60 }
 0x243   :  { %v823_v6 = vpop.f32.mrf.mxu2  ;;  %v3411_v34 = vmul.f32 %v1358_v8, %v3175_v14  ;;  %v872_v36 = vpop.f32.mrf.mxu3  ;;  %v3420_v58 = vadd.f32 %v725_v1, %v3012_v22  ;;  %v1356_v21 = vmul.f32 0.5, %v1292_v15  ;;  %2417 = vtanh.f32 %v1175_v5 }
 0x244   :  { %v2410_v51 = vpop.eup %2409  ;;  %v1173_v25 = vmul.f32 0.7978846, %v1109_v17  ;;  %v1049_v14 = vmul.f32 0.044715, %v985_v53  ;;  %v3423_v46 = vmul.f32 %v1355_v35, %v3829_v54  ;;  %v3426_v31 = vmul.f32 %v1359_v63, %v3183_v12 }
 0x245   :  { %v1361_v3 = vmul.f32 0.5, %v1297_v4  ;;  %v2412_v56 = vpop.eup %2411  ;;  %v3429_v45 = vadd.f32 %v774_v23, %v3016_v9  ;;  %v1474_v42 = vpack.c.bf16 %v3411_v34, %v3401_v0  ;;  %v1357_v38 = vmul.f32 0.5, %v1293_v7 }
 0x246   :  { %v1112_v8 = vadd.f32 %v1048_v24, %v3348_v62  ;;  %v2414_v40 = vpop.eup %2413  ;;  %v986_v20 = vmul.f32 %v922_v55, %v3404_v30  ;;  %v923_v35 = vmul.f32 %v3417_v57, %v3417_v57  ;;  %v3438_v12 = vmul.f32 %v1360_v59, %v3219_v13  ;;  %v728_v24 = vpop.f32.mrf.mxu0 }
 0x247   :  { %v1298_v60 = vadd.f32 1.0, %v2410_v51  ;;  %v3442_v17 = vadd.f32 %v3369_v33, %v3018_v41  ;;  %v926_v1 = vmul.f32 %v3420_v58, %v3420_v58  ;;  %v3447_v15 = vmul.f32 %v1356_v21, %v3161_v43 }
 0x248   :  { %2419 = vtanh.f32 %v1173_v25  ;;  %v2416_v5 = vpop.eup %2415  ;;  %v1475_v53 = vpack.c.bf16 %v3426_v31, %v3423_v46  ;;  %v3452_v23 = vmul.f32 %v1361_v3, %v3223_v47  ;;  %v1299_v13 = vadd.f32 1.0, %v2412_v56  ;;  %v777_v21 = vpop.f32.mrf.mxu1 }
 0x249   :  { %v1113_v63 = vadd.f32 %v1049_v14, %v3361_v48  ;;  %v2418_v4 = vpop.eup %2417  ;;  %v927_v33 = vmul.f32 %v3429_v45, %v3429_v45  ;;  %v3458_v7 = vmul.f32 %v1357_v38, %v3171_v2  ;;  %v1302_v43 = vadd.f32 1.0, %v2414_v40 }
 0x24a   :  { %v1176_v55 = vmul.f32 0.7978846, %v1112_v8  ;;  %v1050_v59 = vmul.f32 0.044715, %v986_v20  ;;  %v987_v51 = vmul.f32 %v923_v35, %v3417_v57  ;;  %v3830_v47 = vpack.c.bf16 %v3324_v27, %v3321_v50 }
 0x24b   :  { %v1476_v25 = vpack.c.bf16 %v3438_v12, %v3447_v15  ;;  %v1362_v14 = vmul.f32 0.5, %v1298_v60  ;;  %v924_v2 = vmul.f32 %v3442_v17, %v3442_v17  ;;  %v990_v54 = vmul.f32 %v926_v1, %v3420_v58  ;;  %v826_v56 = vpop.f32.mrf.mxu2  ;;  %v875_v27 = vpop.f32.mrf.mxu3 }
 0x24c   :  { %v3473_v3 = vadd.f32 %v823_v6, %v3018_v41  ;;  %v1300_v50 = vadd.f32 1.0, %v2416_v5  ;;  %v1477_v61 = vpack.c.bf16 %v3452_v23, %v3458_v7  ;;  %v1303_v11 = vadd.f32 1.0, %v2418_v4 }
 0x24d   :  { %v1177_v38 = vmul.f32 0.7978846, %v1113_v63  ;;  %v991_v40 = vmul.f32 %v927_v33, %v3429_v45  ;;  %v3482_v6 = vadd.f32 %v872_v36, %v3020_v26  ;;  %v1366_v20 = vmul.f32 0.5, %v1302_v43 }
 0x24e   :  { %v2420_v8 = vpop.eup %2419  ;;  %2421 = vtanh.f32 %v1176_v55  ;;  %v1114_v10 = vadd.f32 %v1050_v59, %v3404_v30  ;;  %v1051_v37 = vmul.f32 0.044715, %v987_v51  ;;  %v988_v35 = vmul.f32 %v924_v2, %v3442_v17 }
 0x24f   :  { %v1054_v60 = vmul.f32 0.044715, %v990_v54  ;;  %v928_v1 = vmul.f32 %v3473_v3, %v3473_v3  ;;  %v1364_v36 = vmul.f32 0.5, %v1300_v50  ;;  %v3496_v5 = vadd.f32 %v728_v24, %v3012_v22 }
 0x250   :  { %1771 = vmatmul.bf16.gmra.mxu0 %v3830_v47  ;;  %1820 = vmatmul.bf16.gmra.mxu1 %v1471_v32  ;;  %v1363_v32 = vmul.f32 0.5, %v1299_v13  ;;  %v1367_v13 = vmul.f32 0.5, %v1303_v11  ;;  %2423 = vtanh.f32 %v1177_v38  ;;  %v1301_v63 = vadd.f32 1.0, %v2420_v8  ;;  %v779_v11 = vpop.f32.mrf.mxu1 }
 0x251   :  { %1869 = vmatmul.bf16.gmra.mxu2 %v1472_v29  ;;  %1918 = vmatmul.bf16.gmra.mxu3 %v1473_v18  ;;  %v3487_v29 = vadd.f32 %v3371_v19, %v3020_v26  ;;  %v3490_v18 = vmul.f32 %v1362_v14, %v3283_v49  ;;  %v1055_v4 = vmul.f32 0.044715, %v991_v40  ;;  %v929_v19 = vmul.f32 %v3482_v6, %v3482_v6 }
 0x252   :  { %v3501_v49 = vadd.f32 %v777_v21, %v3016_v9  ;;  %v3504_v33 = vmul.f32 %v1366_v20, %v3297_v39  ;;  %v1178_v43 = vmul.f32 0.7978846, %v1114_v10  ;;  %v1115_v55 = vadd.f32 %v1051_v37, %v3417_v57  ;;  %v730_v21 = vpop.f32.mrf.mxu0 }
 0x253   :  { %v925_v24 = vmul.f32 %v3487_v29, %v3487_v29  ;;  %v3510_v59 = vmul.f32 %v1363_v32, %v3293_v52  ;;  %v1052_v47 = vmul.f32 0.044715, %v988_v35  ;;  %v1118_v14 = vadd.f32 %v1054_v60, %v3420_v58  ;;  %v877_v35 = vpop.f32.mrf.mxu3 }
 0x254   :  { %v2422_v51 = vpop.eup %2421  ;;  %v992_v2 = vmul.f32 %v928_v1, %v3473_v3  ;;  %v3515_v54 = vmul.f32 %v1364_v36, %v3305_v28  ;;  %v930_v39 = vmul.f32 %v3496_v5, %v3496_v5  ;;  %v3520_v50 = vadd.f32 %v826_v56, %v3018_v41  ;;  %v828_v28 = vpop.f32.mrf.mxu2 }
 0x255   :  { %v3523_v52 = vmul.f32 %v1367_v13, %v3312_v44  ;;  %v1365_v32 = vmul.f32 0.5, %v1301_v63  ;;  %v1119_v38 = vadd.f32 %v1055_v4, %v3429_v45  ;;  %v993_v8 = vmul.f32 %v929_v19, %v3482_v6 }
 0x256   :  { %v931_v40 = vmul.f32 %v3501_v49, %v3501_v49  ;;  %v1478_v20 = vpack.c.bf16 %v3504_v33, %v3490_v18  ;;  %v2424_v10 = vpop.eup %2423  ;;  %2425 = vtanh.f32 %v1178_v43  ;;  %v1179_v56 = vmul.f32 0.7978846, %v1115_v55 }
 0x257   :  { %v989_v37 = vmul.f32 %v925_v24, %v3487_v29  ;;  %v1304_v44 = vadd.f32 1.0, %v2422_v51  ;;  %v1116_v60 = vadd.f32 %v1052_v47, %v3442_v17  ;;  %v1182_v1 = vmul.f32 0.7978846, %v1118_v14 }
 0x258   :  { %v1056_v36 = vmul.f32 0.044715, %v992_v2  ;;  %v3534_v13 = vadd.f32 %v875_v27, %v3020_v26  ;;  %v994_v63 = vmul.f32 %v930_v39, %v3496_v5  ;;  %v932_v4 = vmul.f32 %v3520_v50, %v3520_v50 }
 0x259   :  { %v3540_v19 = vadd.f32 %v730_v21, %v3012_v22  ;;  %v1479_v43 = vpack.c.bf16 %v3523_v52, %v3510_v59  ;;  %v1183_v55 = vmul.f32 0.7978846, %v1119_v38  ;;  %v1057_v24 = vmul.f32 0.044715, %v993_v8 }
 0x25a   :  { %v995_v51 = vmul.f32 %v931_v40, %v3501_v49  ;;  %v1305_v47 = vadd.f32 1.0, %v2424_v10  ;;  %2427 = vtanh.f32 %v1179_v56  ;;  %v1053_v14 = vmul.f32 0.044715, %v989_v37  ;;  %v733_v15 = vpop.f32.mrf.mxu0  ;;  %v782_v40 = vpop.f32.mrf.mxu1 }
 0x25b   :  { %v3546_v27 = vadd.f32 %v779_v11, %v3016_v9  ;;  %v1368_v2 = vmul.f32 0.5, %v1304_v44  ;;  %v1180_v21 = vmul.f32 0.7978846, %v1116_v60  ;;  %2429 = vtanh.f32 %v1182_v1 }
 0x25c   :  { %v1120_v39 = vadd.f32 %v1056_v36, %v3473_v3  ;;  %v933_v38 = vmul.f32 %v3534_v13, %v3534_v13  ;;  %v2426_v11 = vpop.eup %2425  ;;  %v1058_v8 = vmul.f32 0.044715, %v994_v63  ;;  %v996_v0 = vmul.f32 %v932_v4, %v3520_v50  ;;  %v3589_v36 = vpop.f32.mrf.mxu3 }
 0x25d   :  { %v934_v34 = vmul.f32 %v3540_v19, %v3540_v19  ;;  %v3564_v46 = vadd.f32 %v828_v28, %v3018_v41  ;;  %2431 = vtanh.f32 %v1183_v55  ;;  %v1121_v31 = vadd.f32 %v1057_v24, %v3482_v6 }
 0x25e   :  { %v3571_v12 = vadd.f32 %v877_v35, %v3020_v26  ;;  %v3577_v28 = vmul.f32 %v1368_v2, %v3348_v62  ;;  %v1369_v10 = vmul.f32 0.5, %v1305_v47  ;;  %v1184_v23 = vmul.f32 0.7978846, %v1120_v39 }
 0x25f   :  { %v997_v7 = vmul.f32 %v933_v38, %v3534_v13  ;;  %v3583_v56 = vmul.f32 %v1365_v32, %v3332_v16  ;;  %v1306_v37 = vadd.f32 1.0, %v2426_v11  ;;  %v1122_v44 = vadd.f32 %v1058_v8, %v3496_v5 }
 0x260   :  { %1776 = vmatmul.bf16.gmra.mxu0 %v1474_v42  ;;  %1825 = vmatmul.bf16.gmra.mxu1 %v1475_v53  ;;  %v1059_v42 = vmul.f32 0.044715, %v995_v51  ;;  %v1117_v53 = vadd.f32 %v1053_v14, %v3487_v29  ;;  %v2428_v35 = vpop.eup %2427  ;;  %v1060_v60 = vmul.f32 0.044715, %v996_v0  ;;  %v998_v1 = vmul.f32 %v934_v34, %v3540_v19 }
 0x261   :  { %1874 = vmatmul.bf16.gmra.mxu2 %v1476_v25  ;;  %1923 = vmatmul.bf16.gmra.mxu3 %v1477_v61  ;;  %v935_v25 = vmul.f32 %v3546_v27, %v3546_v27  ;;  %v3580_v61 = vpop.f32.mrf.mxu2  ;;  %v936_v62 = vmul.f32 %v3564_v46, %v3564_v46  ;;  %v2430_v63 = vpop.eup %2429  ;;  %2433 = vtanh.f32 %v1180_v21  ;;  %v1185_v4 = vmul.f32 0.7978846, %v1121_v31 }
 0x262   :  { %v1123_v55 = vadd.f32 %v1059_v42, %v3501_v49  ;;  %v937_v16 = vmul.f32 %v3571_v12, %v3571_v12  ;;  %v1181_v32 = vmul.f32 0.7978846, %v1117_v53  ;;  %v1480_v51 = vpack.c.bf16 %v3577_v28, %v3515_v54 }
 0x263   :  { %v999_v24 = vmul.f32 %v935_v25, %v3546_v27  ;;  %v1433_v47 = vmul.f32 %v1369_v10, %v3361_v48  ;;  %v2432_v14 = vpop.eup %2431  ;;  %2435 = vtanh.f32 %v1184_v23  ;;  %v1061_v2 = vmul.f32 0.044715, %v997_v7  ;;  %v735_v7 = vpop.f32.mrf.mxu0 }
 0x264   :  { %v1370_v39 = vmul.f32 0.5, %v1306_v37  ;;  %v1307_v38 = vadd.f32 1.0, %v2428_v35  ;;  %v1186_v21 = vmul.f32 0.7978846, %v1122_v44  ;;  %v1124_v11 = vadd.f32 %v1060_v60, %v3520_v50 }
 0x265   :  { %v1062_v8 = vmul.f32 0.044715, %v998_v1  ;;  %v1000_v0 = vmul.f32 %v936_v62, %v3564_v46  ;;  %2437 = vtanh.f32 %v1185_v4  ;;  %v1187_v34 = vmul.f32 0.7978846, %v1123_v55  ;;  %v784_v1 = vpop.f32.mrf.mxu1 }
 0x266   :  { %v1001_v31 = vmul.f32 %v937_v16, %v3571_v12  ;;  %v1310_v42 = vadd.f32 1.0, %v2430_v63  ;;  %2439 = vtanh.f32 %v1181_v32  ;;  %v1063_v54 = vmul.f32 0.044715, %v999_v24  ;;  %v882_v16 = vpop.f32.mrf.mxu3 }
 0x267   :  { %v1481_v48 = vpack.c.bf16 %v1433_v47, %v3583_v56  ;;  %v1311_v53 = vadd.f32 1.0, %v2432_v14  ;;  %v2434_v25 = vpop.eup %2433  ;;  %v1125_v28 = vadd.f32 %v1061_v2, %v3534_v13  ;;  %v3604_v10 = vadd.f32 %v733_v15, %v3012_v22 }
 0x268   :  { %v3607_v23 = vadd.f32 %v782_v40, %v3016_v9  ;;  %v3609_v37 = vmul.f32 0.5, %v1307_v38  ;;  %2441 = vtanh.f32 %v1186_v21  ;;  %v1188_v35 = vmul.f32 0.7978846, %v1124_v11 }
 0x269   :  { %v1126_v44 = vadd.f32 %v1062_v8, %v3540_v19  ;;  %v1064_v60 = vmul.f32 0.044715, %v1000_v0  ;;  %v2436_v56 = vpop.eup %2435  ;;  %2443 = vtanh.f32 %v1187_v34  ;;  %v1065_v62 = vmul.f32 0.044715, %v1001_v31  ;;  %v833_v63 = vpop.f32.mrf.mxu2 }
 0x26a   :  { %v1374_v4 = vmul.f32 0.5, %v1310_v42  ;;  %v3613_v15 = vmul.f32 %v1370_v39, %v3404_v30  ;;  %v1127_v40 = vadd.f32 %v1063_v54, %v3546_v27  ;;  %v3617_v55 = vadd.f32 %v735_v7, %v3012_v22 }
 0x26b   :  { %v1375_v32 = vmul.f32 0.5, %v1311_v53  ;;  %v1308_v24 = vadd.f32 1.0, %v2434_v25  ;;  %v2438_v47 = vpop.eup %2437  ;;  %v1189_v14 = vmul.f32 0.7978846, %v1125_v28  ;;  %v938_v30 = vmul.f32 %v3604_v10, %v3604_v10 }
 0x26c   :  { %v939_v2 = vmul.f32 %v3607_v23, %v3607_v23  ;;  %v3630_v39 = vadd.f32 %v784_v1, %v3016_v9  ;;  %v2440_v18 = vpop.eup %2439  ;;  %2445 = vtanh.f32 %v1188_v35  ;;  %v1190_v33 = vmul.f32 0.7978846, %v1126_v44 }
 0x26d   :  { %v1128_v59 = vadd.f32 %v1064_v60, %v3564_v46  ;;  %v3634_v52 = vadd.f32 %v833_v63, %v3018_v41  ;;  %v3642_v38 = vadd.f32 %v882_v16, %v3020_v26  ;;  %v1312_v21 = vadd.f32 1.0, %v2436_v56 }
 0x26e   :  { %v1191_v11 = vmul.f32 0.7978846, %v1127_v40  ;;  %v942_v8 = vmul.f32 %v3617_v55, %v3617_v55  ;;  %v1438_v0 = vmul.f32 %v1374_v4, %v3420_v58  ;;  %v1313_v34 = vadd.f32 1.0, %v2438_v47 }
 0x26f   :  { %v1002_v42 = vmul.f32 %v938_v30, %v3604_v10  ;;  %v3655_v54 = vadd.f32 %v3589_v36, %v3020_v26  ;;  %2447 = vtanh.f32 %v1190_v33  ;;  %v1192_v53 = vmul.f32 0.7978846, %v1128_v59 }
 0x270   :  { %1781 = vmatmul.bf16.gmra.mxu0 %v1478_v20  ;;  %1830 = vmatmul.bf16.gmra.mxu1 %v1479_v43  ;;  %v1129_v20 = vadd.f32 %v1065_v62, %v3571_v12  ;;  %v3639_v43 = vadd.f32 %v3580_v61, %v3018_v41  ;;  %v1003_v61 = vmul.f32 %v939_v2, %v3607_v23  ;;  %v1309_v58 = vadd.f32 1.0, %v2440_v18 }
 0x271   :  { %1879 = vmatmul.bf16.gmra.mxu2 %v1480_v51  ;;  %1928 = vmatmul.bf16.gmra.mxu3 %v1481_v48  ;;  %v3644_v51 = vpop.eup %2441  ;;  %v943_v48 = vmul.f32 %v3630_v39, %v3630_v39  ;;  %v944_v25 = vmul.f32 %v3634_v52, %v3634_v52  ;;  %v945_v35 = vmul.f32 %v3642_v38, %v3642_v38  ;;  %v1376_v44 = vmul.f32 0.5, %v1312_v21 }
 0x272   :  { %v3649_v31 = vpop.eup %2443  ;;  %v1193_v28 = vmul.f32 0.7978846, %v1129_v20  ;;  %v940_v7 = vmul.f32 %v3639_v43, %v3639_v43  ;;  %2449 = vtanh.f32 %v1191_v11  ;;  %v1006_v36 = vmul.f32 %v942_v8, %v3617_v55 }
 0x273   :  { %v2446_v60 = vpop.eup %2445  ;;  %v1439_v1 = vmul.f32 %v1375_v32, %v3429_v45  ;;  %v1377_v56 = vmul.f32 0.5, %v1313_v34  ;;  %v1066_v62 = vmul.f32 0.044715, %v1002_v42  ;;  %v941_v63 = vmul.f32 %v3655_v54, %v3655_v54 }
 0x274   :  { %v1007_v4 = vmul.f32 %v943_v48, %v3630_v39  ;;  %v1372_v40 = vmul.f32 0.5, %v1308_v24  ;;  %2451 = vtanh.f32 %v1192_v53  ;;  %v1067_v16 = vmul.f32 0.044715, %v1003_v61 }
 0x275   :  { %v1008_v47 = vmul.f32 %v944_v25, %v3634_v52  ;;  %v1373_v30 = vmul.f32 0.5, %v1309_v58  ;;  %2453 = vtanh.f32 %v1193_v28  ;;  %v1004_v2 = vmul.f32 %v940_v7, %v3639_v43  ;;  %v2448_v32 = vpop.eup %2447 }
 0x276   :  { %v1009_v18 = vmul.f32 %v945_v35, %v3642_v38  ;;  %v1440_v45 = vmul.f32 %v1376_v44, %v3473_v3  ;;  %2455 = vtanh.f32 %v1189_v14  ;;  %v1070_v33 = vmul.f32 0.044715, %v1006_v36 }
 0x277   :  { %v1435_v59 = vmul.f32 %v3609_v37, %v3417_v57  ;;  %v1441_v24 = vmul.f32 %v1377_v56, %v3482_v6  ;;  %v1130_v20 = vadd.f32 %v1066_v62, %v3604_v10  ;;  %v1005_v21 = vmul.f32 %v941_v63, %v3655_v54 }
 0x278   :  { %v1071_v11 = vmul.f32 0.044715, %v1007_v4  ;;  %v1436_v8 = vmul.f32 %v1372_v40, %v3442_v17  ;;  %v2450_v34 = vpop.eup %2449  ;;  %v1072_v42 = vmul.f32 0.044715, %v1008_v47  ;;  %v1482_v61 = vpack.c.bf16 %v1438_v0, %v3613_v15 }
 0x279   :  { %v1483_v3 = vpack.c.bf16 %v1439_v1, %v1435_v59  ;;  %v1437_v14 = vmul.f32 %v1373_v30, %v3487_v29  ;;  %v1131_v48 = vadd.f32 %v1067_v16, %v3607_v23  ;;  %v1068_v53 = vmul.f32 0.044715, %v1004_v2 }
 0x27a   :  { %v1073_v57 = vmul.f32 0.044715, %v1009_v18  ;;  %v1484_v37 = vpack.c.bf16 %v1440_v45, %v1436_v8  ;;  %v2452_v6 = vpop.eup %2451  ;;  %v1134_v25 = vadd.f32 %v1070_v33, %v3617_v55  ;;  %v1194_v17 = vmul.f32 0.7978846, %v1130_v20 }
 0x27b   :  { %v1485_v58 = vpack.c.bf16 %v1441_v24, %v1437_v14  ;;  %v2454_v28 = vpop.eup %2453  ;;  %v1069_v7 = vmul.f32 0.044715, %v1005_v21  ;;  %v1135_v35 = vadd.f32 %v1071_v11, %v3630_v39  ;;  %v1136_v29 = vadd.f32 %v1072_v42, %v3634_v52 }
 0x27c   :  { %v2456_v15 = vpop.eup %2455  ;;  %v1318_v0 = vadd.f32 1.0, %v2448_v32  ;;  %v1319_v44 = vadd.f32 1.0, %v2450_v34  ;;  %v1195_v36 = vmul.f32 0.7978846, %v1131_v48  ;;  %v1132_v1 = vadd.f32 %v1068_v53, %v3639_v43 }
 0x27d   :  { %v1137_v56 = vadd.f32 %v1073_v57, %v3642_v38  ;;  %v1320_v62 = vadd.f32 1.0, %v2452_v6  ;;  %v1198_v63 = vmul.f32 0.7978846, %v1134_v25  ;;  %v1314_v4 = vadd.f32 1.0, %v3644_v51 }
 0x27e   :  { %v1315_v40 = vadd.f32 1.0, %v3649_v31  ;;  %v1321_v16 = vadd.f32 1.0, %v2454_v28  ;;  %2457 = vtanh.f32 %v1194_v17  ;;  %v1133_v47 = vadd.f32 %v1069_v7, %v3655_v54 }
 0x27f   :  { %v1199_v30 = vmul.f32 0.7978846, %v1135_v35  ;;  %v1316_v2 = vadd.f32 1.0, %v2446_v60  ;;  %v1200_v18 = vmul.f32 0.7978846, %v1136_v29  ;;  %v1382_v45 = vmul.f32 0.5, %v1318_v0 }
 0x280   :  { %1786 = vmatmul.bf16.gmra.mxu0 %v1482_v61  ;;  %1835 = vmatmul.bf16.gmra.mxu1 %v1483_v3  ;;  %v1383_v32 = vmul.f32 0.5, %v1319_v44  ;;  %v1317_v33 = vadd.f32 1.0, %v2456_v15  ;;  %2459 = vtanh.f32 %v1195_v36  ;;  %v1196_v59 = vmul.f32 0.7978846, %v1132_v1 }
 0x281   :  { %1884 = vmatmul.bf16.gmra.mxu2 %v1484_v37  ;;  %1933 = vmatmul.bf16.gmra.mxu3 %v1485_v58  ;;  %v1201_v24 = vmul.f32 0.7978846, %v1137_v56  ;;  %v1384_v20 = vmul.f32 0.5, %v1320_v62  ;;  %2461 = vtanh.f32 %v1198_v63  ;;  %v1378_v21 = vmul.f32 0.5, %v1314_v4 }
 0x282   :  { %v1379_v11 = vmul.f32 0.5, %v1315_v40  ;;  %v1385_v51 = vmul.f32 0.5, %v1321_v16  ;;  %v1197_v8 = vmul.f32 0.7978846, %v1133_v47  ;;  %2463 = vtanh.f32 %v1199_v30 }
 0x283   :  { %v1380_v31 = vmul.f32 0.5, %v1316_v2  ;;  %2465 = vtanh.f32 %v1200_v18  ;;  %v1446_v34 = vmul.f32 %v1382_v45, %v3540_v19  ;;  %v1447_v60 = vmul.f32 %v1383_v32, %v3546_v27 }
 0x284   :  { %v1381_v42 = vmul.f32 0.5, %v1317_v33  ;;  %v2458_v61 = vpop.eup %2457  ;;  %2467 = vtanh.f32 %v1201_v24  ;;  %v1448_v3 = vmul.f32 %v1384_v20, %v3564_v46  ;;  %v1442_v14 = vmul.f32 %v1378_v21, %v3496_v5 }
 0x285   :  { %2469 = vtanh.f32 %v1196_v59  ;;  %v1443_v48 = vmul.f32 %v1379_v11, %v3501_v49  ;;  %v1449_v53 = vmul.f32 %v1385_v51, %v3571_v12  ;;  %v1444_v37 = vmul.f32 %v1380_v31, %v3520_v50 }
 0x286   :  { %v2460_v57 = vpop.eup %2459  ;;  %2471 = vtanh.f32 %v1197_v8  ;;  %v1486_v19 = vpack.c.bf16 %v1446_v34, %v1442_v14  ;;  %v1445_v27 = vmul.f32 %v1381_v42, %v3534_v13  ;;  %v1322_v50 = vadd.f32 1.0, %v2458_v61 }
 0x287   :  { %v2462_v6 = vpop.eup %2461  ;;  %v1487_v25 = vpack.c.bf16 %v1447_v60, %v1443_v48  ;;  %v1488_v28 = vpack.c.bf16 %v1448_v3, %v1444_v37  ;;  %v1323_v29 = vadd.f32 1.0, %v2460_v57 }
 0x288   :  { %v2464_v58 = vpop.eup %2463  ;;  %v1489_v46 = vpack.c.bf16 %v1449_v53, %v1445_v27  ;;  %v1326_v12 = vadd.f32 1.0, %v2462_v6  ;;  %v1386_v62 = vmul.f32 0.5, %v1322_v50 }
 0x289   :  { %v2466_v17 = vpop.eup %2465  ;;  %v1327_v7 = vadd.f32 1.0, %v2464_v58  ;;  %v1387_v63 = vmul.f32 0.5, %v1323_v29 }
 0x28a   :  { %v2468_v5 = vpop.eup %2467  ;;  %v1328_v15 = vadd.f32 1.0, %v2466_v17  ;;  %v1390_v36 = vmul.f32 0.5, %v1326_v12  ;;  %v1450_v18 = vmul.f32 %v1386_v62, %v3604_v10 }
 0x28b   :  { %v2470_v49 = vpop.eup %2469  ;;  %v1329_v0 = vadd.f32 1.0, %v2468_v5  ;;  %v1391_v13 = vmul.f32 0.5, %v1327_v7  ;;  %v1451_v45 = vmul.f32 %v1387_v63, %v3607_v23 }
 0x28c   :  { %v2472_v35 = vpop.eup %2471  ;;  %v1324_v44 = vadd.f32 1.0, %v2470_v49  ;;  %v1392_v56 = vmul.f32 0.5, %v1328_v15  ;;  %v1454_v16 = vmul.f32 %v1390_v36, %v3617_v55 }
 0x28d   :  { %v1325_v1 = vadd.f32 1.0, %v2472_v35  ;;  %v1393_v4 = vmul.f32 0.5, %v1329_v0  ;;  %v1455_v47 = vmul.f32 %v1391_v13, %v3630_v39 }
 0x28e   :  { %v1388_v40 = vmul.f32 0.5, %v1324_v44  ;;  %v1456_v2 = vmul.f32 %v1392_v56, %v3634_v52  ;;  %v1490_v59 = vpack.c.bf16 %v1454_v16, %v1450_v18 }
 0x28f   :  { %v1389_v30 = vmul.f32 0.5, %v1325_v1  ;;  %v1457_v32 = vmul.f32 %v1393_v4, %v3642_v38  ;;  %v1491_v24 = vpack.c.bf16 %v1455_v47, %v1451_v45 }
 0x290   :  { %1791 = vmatmul.bf16.gmra.mxu0 %v1486_v19  ;;  %1840 = vmatmul.bf16.gmra.mxu1 %v1487_v25  ;;  %v1452_v33 = vmul.f32 %v1388_v40, %v3639_v43 }
 0x291   :  { %1889 = vmatmul.bf16.gmra.mxu2 %v1488_v28  ;;  %1938 = vmatmul.bf16.gmra.mxu3 %v1489_v46  ;;  %v1453_v20 = vmul.f32 %v1389_v30, %v3655_v54  ;;  %v3748_v46 = vld [vmem:[%s3804_s6] ss:$0 sm:$0xff]  ;;  %s2655_s6 = smov [#allocation11]  }
 0x292   :  { %v1492_v21 = vpack.c.bf16 %v1456_v2, %v1452_v33  ;;  %s1974_s9 = sshll.u32 %s2655_s6, 4  ;;  %s1975_s9 = int_to_ptr.vmem [resolvable:$true] %s1974_s9 }
 0x293   :  { %v1493_v55 = vpack.c.bf16 %v1457_v32, %v1453_v20 }
 0x2a0   :  { %1796 = vmatmul.bf16.gmra.mxu0 %v1490_v59  ;;  %1845 = vmatmul.bf16.gmra.mxu1 %v1491_v24 }
 0x2a1   :  { %1894 = vmatmul.bf16.gmra.mxu2 %v1492_v21  ;;  %1943 = vmatmul.bf16.gmra.mxu3 %v1493_v55 }
 0x2ad   :  { %v738_v39 = vpop.f32.mrf.mxu0  ;;  %v787_v52 = vpop.f32.mrf.mxu1 }
 0x2ae   :  { %v3708_v10 = vadd.f32 %v738_v39, %v3012_v22  ;;  %v3711_v23 = vadd.f32 %v787_v52, %v3016_v9 }
 0x2b0   :  { %v946_v43 = vmul.f32 %v3708_v10, %v3708_v10  ;;  %v947_v38 = vmul.f32 %v3711_v23, %v3711_v23 }
 0x2b2   :  { %v1010_v54 = vmul.f32 %v946_v43, %v3708_v10  ;;  %v1011_v11 = vmul.f32 %v947_v38, %v3711_v23 }
 0x2b4   :  { %v1074_v51 = vmul.f32 0.044715, %v1010_v54  ;;  %v1075_v8 = vmul.f32 0.044715, %v1011_v11  ;;  %v836_v31 = vpop.f32.mrf.mxu2  ;;  %v885_v34 = vpop.f32.mrf.mxu3 }
 0x2b5   :  { %v3720_v60 = vadd.f32 %v836_v31, %v3018_v41  ;;  %v3723_v42 = vadd.f32 %v885_v34, %v3020_v26  ;;  %v740_v61 = vpop.f32.mrf.mxu0  ;;  %v789_v3 = vpop.f32.mrf.mxu1 }
 0x2b6   :  { %v1138_v14 = vadd.f32 %v1074_v51, %v3708_v10  ;;  %v1139_v48 = vadd.f32 %v1075_v8, %v3711_v23  ;;  %v3728_v53 = vadd.f32 %v740_v61, %v3012_v22  ;;  %v3731_v57 = vadd.f32 %v789_v3, %v3016_v9 }
 0x2b7   :  { %v948_v37 = vmul.f32 %v3720_v60, %v3720_v60  ;;  %v949_v6 = vmul.f32 %v3723_v42, %v3723_v42 }
 0x2b8   :  { %v1202_v19 = vmul.f32 0.7978846, %v1138_v14  ;;  %v1203_v25 = vmul.f32 0.7978846, %v1139_v48  ;;  %v950_v27 = vmul.f32 %v3728_v53, %v3728_v53  ;;  %v951_v58 = vmul.f32 %v3731_v57, %v3731_v57 }
 0x2b9   :  { %v1012_v22 = vmul.f32 %v948_v37, %v3720_v60  ;;  %v1013_v28 = vmul.f32 %v949_v6, %v3723_v42 }
 0x2ba   :  { %v1014_v9 = vmul.f32 %v950_v27, %v3728_v53  ;;  %v1015_v17 = vmul.f32 %v951_v58, %v3731_v57  ;;  %2473 = vtanh.f32 %v1202_v19 }
 0x2bb   :  { %v1076_v5 = vmul.f32 0.044715, %v1012_v22  ;;  %v1077_v49 = vmul.f32 0.044715, %v1013_v28  ;;  %2475 = vtanh.f32 %v1203_v25 }
 0x2bc   :  { %v1078_v12 = vmul.f32 0.044715, %v1014_v9  ;;  %v1079_v7 = vmul.f32 0.044715, %v1015_v17  ;;  %v838_v35 = vpop.f32.mrf.mxu2  ;;  %v887_v15 = vpop.f32.mrf.mxu3 }
 0x2bd   :  { %v1140_v50 = vadd.f32 %v1076_v5, %v3720_v60  ;;  %v1141_v29 = vadd.f32 %v1077_v49, %v3723_v42  ;;  %v3753_v0 = vadd.f32 %v838_v35, %v3018_v41  ;;  %v3756_v44 = vadd.f32 %v887_v15, %v3020_v26  ;;  %v1767_v36 = vpop.f32.mrf.mxu0  ;;  %v1816_v13 = vpop.f32.mrf.mxu1 }
 0x2be   :  { %v1142_v1 = vadd.f32 %v1078_v12, %v3728_v53  ;;  %v1143_v56 = vadd.f32 %v1079_v7, %v3731_v57  ;;  %v1768_v62 = vadd.f32 %v3748_v46, %v1767_v36 }
 0x2bf   :  { %v1204_v63 = vmul.f32 0.7978846, %v1140_v50  ;;  %v1205_v4 = vmul.f32 0.7978846, %v1141_v29  ;;  %v952_v40 = vmul.f32 %v3753_v0, %v3753_v0  ;;  %v953_v41 = vmul.f32 %v3756_v44, %v3756_v44 }
 0x2c0   :  { %v1206_v16 = vmul.f32 0.7978846, %v1142_v1  ;;  %v1207_v47 = vmul.f32 0.7978846, %v1143_v56  ;;  %v2474_v26 = vpop.eup %2473  ;;  %v1817_v33 = vadd.f32 %v1816_v13, %v1768_v62 }
 0x2c1   :  { %2477 = vtanh.f32 %v1204_v63  ;;  %v1016_v30 = vmul.f32 %v952_v40, %v3753_v0  ;;  %v1017_v2 = vmul.f32 %v953_v41, %v3756_v44  ;;  %v2476_v18 = vpop.eup %2475  ;;  %v1330_v43 = vadd.f32 1.0, %v2474_v26 }
 0x2c2   :  { %2479 = vtanh.f32 %v1205_v4  ;;  %v1331_v38 = vadd.f32 1.0, %v2476_v18 }
 0x2c3   :  { %2481 = vtanh.f32 %v1206_v16  ;;  %v1080_v45 = vmul.f32 0.044715, %v1016_v30  ;;  %v1081_v32 = vmul.f32 0.044715, %v1017_v2  ;;  %v1394_v48 = vmul.f32 0.5, %v1330_v43 }
 0x2c4   :  { %2483 = vtanh.f32 %v1207_v47  ;;  %v1865_v59 = vpop.f32.mrf.mxu2  ;;  %v1914_v55 = vpop.f32.mrf.mxu3  ;;  %v1395_v19 = vmul.f32 0.5, %v1331_v38 }
 0x2c5   :  { %v1144_v24 = vadd.f32 %v1080_v45, %v3753_v0  ;;  %v1145_v20 = vadd.f32 %v1081_v32, %v3756_v44  ;;  %v1866_v21 = vadd.f32 %v1865_v59, %v1817_v33  ;;  %v1769_v39 = vpop.f32.mrf.mxu0  ;;  %v1818_v52 = vpop.f32.mrf.mxu1  ;;  %v1458_v12 = vmul.f32 %v1394_v48, %v3708_v10 }
 0x2c6   :  { %v1770_v31 = vadd.f32 %v3748_v46, %v1769_v39  ;;  %v1459_v29 = vmul.f32 %v1395_v19, %v3711_v23 }
 0x2c7   :  { %v2478_v54 = vpop.eup %2477  ;;  %v1208_v11 = vmul.f32 0.7978846, %v1144_v24  ;;  %v1209_v51 = vmul.f32 0.7978846, %v1145_v20  ;;  %v1915_v8 = vadd.f32 %v1914_v55, %v1866_v21 }
 0x2c8   :  { %v2480_v34 = vpop.eup %2479  ;;  %v1819_v37 = vadd.f32 %v1818_v52, %v1770_v31  ;;  %v1332_v58 = vadd.f32 1.0, %v2478_v54 }
 0x2c9   :  { %v2482_v61 = vpop.eup %2481  ;;  %2485 = vtanh.f32 %v1208_v11  ;;  %1954 = vst [vmem:[#allocation11] sm:$0xff] %v1915_v8  ;;  %v1333_v5 = vadd.f32 1.0, %v2480_v34 }
 0x2ca   :  { %v2484_v3 = vpop.eup %2483  ;;  %2487 = vtanh.f32 %v1209_v51  ;;  %v1334_v14 = vadd.f32 1.0, %v2482_v61  ;;  %v1396_v62 = vmul.f32 0.5, %v1332_v58 }
 0x2cb   :  { %v1335_v6 = vadd.f32 1.0, %v2484_v3  ;;  %v1397_v40 = vmul.f32 0.5, %v1333_v5 }
 0x2cc   :  { %v1867_v25 = vpop.f32.mrf.mxu2  ;;  %v1398_v27 = vmul.f32 0.5, %v1334_v14  ;;  %v1916_v28 = vpop.f32.mrf.mxu3  ;;  %v1460_v47 = vmul.f32 %v1396_v62, %v3720_v60 }
 0x2cd   :  { %v1868_v22 = vadd.f32 %v1867_v25, %v1819_v37  ;;  %v1772_v9 = vpop.f32.mrf.mxu0  ;;  %v1399_v17 = vmul.f32 0.5, %v1335_v6  ;;  %v1821_v49 = vpop.f32.mrf.mxu1  ;;  %v1461_v2 = vmul.f32 %v1397_v40, %v3723_v42 }
 0x2ce   :  { %v1462_v7 = vmul.f32 %v1398_v27, %v3728_v53  ;;  %v1773_v50 = vadd.f32 %v3748_v46, %v1772_v9 }
 0x2cf   :  { %v2486_v35 = vpop.eup %2485  ;;  %v1917_v15 = vadd.f32 %v1916_v28, %v1868_v22  ;;  %v1463_v36 = vmul.f32 %v1399_v17, %v3731_v57 }
 0x2d0   :  { %v2488_v13 = vpop.eup %2487  ;;  %v1494_v1 = vpack.c.bf16 %v1462_v7, %v1458_v12  ;;  %v1336_v56 = vadd.f32 1.0, %v2486_v35  ;;  %v1822_v41 = vadd.f32 %v1821_v49, %v1773_v50 }
 0x2d1   :  { %1955 = vst [vmem:[#allocation11 + $0x8] sm:$0xff] %v1917_v15  ;;  %v1495_v63 = vpack.c.bf16 %v1463_v36, %v1459_v29  ;;  %v1337_v4 = vadd.f32 1.0, %v2488_v13 }
 0x2d2   :  { %1801 = vmatmul.bf16.gmra.mxu0 %v1494_v1  ;;  %v1400_v10 = vmul.f32 0.5, %v1336_v56 }
 0x2d3   :  { %1850 = vmatmul.bf16.gmra.mxu1 %v1495_v63  ;;  %v1401_v53 = vmul.f32 0.5, %v1337_v4 }
 0x2d4   :  { %v1870_v16 = vpop.f32.mrf.mxu2  ;;  %v1464_v23 = vmul.f32 %v1400_v10, %v3753_v0  ;;  %v1919_v57 = vpop.f32.mrf.mxu3 }
 0x2d5   :  { %v1871_v26 = vadd.f32 %v1870_v16, %v1822_v41  ;;  %v1774_v30 = vpop.f32.mrf.mxu0  ;;  %v1465_v18 = vmul.f32 %v1401_v53, %v3756_v44  ;;  %v1823_v45 = vpop.f32.mrf.mxu1 }
 0x2d6   :  { %v1496_v32 = vpack.c.bf16 %v1464_v23, %v1460_v47  ;;  %v1775_v59 = vadd.f32 %v3748_v46, %v1774_v30 }
 0x2d7   :  { %v1920_v33 = vadd.f32 %v1919_v57, %v1871_v26  ;;  %v1497_v24 = vpack.c.bf16 %v1465_v18, %v1461_v2 }
 0x2d8   :  { %1899 = vmatmul.bf16.gmra.mxu2 %v1496_v32  ;;  %v1824_v20 = vadd.f32 %v1823_v45, %v1775_v59 }
 0x2d9   :  { %1956 = vst [vmem:[#allocation11 + $0x10] sm:$0xff] %v1920_v33  ;;  %1948 = vmatmul.bf16.gmra.mxu3 %v1497_v24 }
 0x2dc   :  { %v1872_v60 = vpop.f32.mrf.mxu2  ;;  %v1921_v0 = vpop.f32.mrf.mxu3 }
 0x2dd   :  { %v1873_v21 = vadd.f32 %v1872_v60, %v1824_v20  ;;  %v1777_v55 = vpop.f32.mrf.mxu0  ;;  %v1826_v39 = vpop.f32.mrf.mxu1 }
 0x2de   :  { %v1778_v42 = vadd.f32 %v3748_v46, %v1777_v55 }
 0x2df   :  { %v1922_v52 = vadd.f32 %v1921_v0, %v1873_v21 }
 0x2e0   :  { %v1827_v44 = vadd.f32 %v1826_v39, %v1778_v42 }
 0x2e1   :  { %1957 = vst [vmem:[#allocation11 + $0x18] sm:$0xff] %v1922_v52 }
 0x2e4   :  { %v1875_v43 = vpop.f32.mrf.mxu2  ;;  %v1924_v54 = vpop.f32.mrf.mxu3 }
 0x2e5   :  { %v1876_v38 = vadd.f32 %v1875_v43, %v1827_v44  ;;  %v1779_v11 = vpop.f32.mrf.mxu0  ;;  %v1828_v51 = vpop.f32.mrf.mxu1 }
 0x2e6   :  { %v1780_v31 = vadd.f32 %v3748_v46, %v1779_v11 }
 0x2e7   :  { %v1925_v8 = vadd.f32 %v1924_v54, %v1876_v38 }
 0x2e8   :  { %v1829_v34 = vadd.f32 %v1828_v51, %v1780_v31 }
 0x2e9   :  { %1958 = vst [vmem:[#allocation11 + $0x20] sm:$0xff] %v1925_v8 }
 0x2ec   :  { %v1877_v61 = vpop.f32.mrf.mxu2  ;;  %v1926_v14 = vpop.f32.mrf.mxu3 }
 0x2ed   :  { %v1878_v3 = vadd.f32 %v1877_v61, %v1829_v34  ;;  %v1782_v48 = vpop.f32.mrf.mxu0  ;;  %v1831_v37 = vpop.f32.mrf.mxu1 }
 0x2ee   :  { %v1783_v19 = vadd.f32 %v3748_v46, %v1782_v48 }
 0x2ef   :  { %v1927_v6 = vadd.f32 %v1926_v14, %v1878_v3 }
 0x2f0   :  { %v1832_v25 = vadd.f32 %v1831_v37, %v1783_v19 }
 0x2f1   :  { %1959 = vst [vmem:[#allocation11 + $0x28] sm:$0xff] %v1927_v6 }
 0x2f4   :  { %v1880_v27 = vpop.f32.mrf.mxu2  ;;  %v1929_v22 = vpop.f32.mrf.mxu3 }
 0x2f5   :  { %v1881_v58 = vadd.f32 %v1880_v27, %v1832_v25  ;;  %v1784_v28 = vpop.f32.mrf.mxu0  ;;  %v1833_v9 = vpop.f32.mrf.mxu1 }
 0x2f6   :  { %v1785_v5 = vadd.f32 %v3748_v46, %v1784_v28 }
 0x2f7   :  { %v1930_v17 = vadd.f32 %v1929_v22, %v1881_v58 }
 0x2f8   :  { %v1834_v49 = vadd.f32 %v1833_v9, %v1785_v5 }
 0x2f9   :  { %1960 = vst [vmem:[#allocation11 + $0x30] sm:$0xff] %v1930_v17 }
 0x2fc   :  { %v1882_v12 = vpop.f32.mrf.mxu2  ;;  %v1931_v35 = vpop.f32.mrf.mxu3 }
 0x2fd   :  { %v1883_v7 = vadd.f32 %v1882_v12, %v1834_v49  ;;  %v1787_v15 = vpop.f32.mrf.mxu0  ;;  %v1836_v50 = vpop.f32.mrf.mxu1 }
 0x2fe   :  { %v1788_v36 = vadd.f32 %v3748_v46, %v1787_v15 }
 0x2ff   :  { %v1932_v29 = vadd.f32 %v1931_v35, %v1883_v7 }
 0x300   :  { %v1837_v13 = vadd.f32 %v1836_v50, %v1788_v36 }
 0x301   :  { %1961 = vst [vmem:[#allocation11 + $0x38] sm:$0xff] %v1932_v29 }
 0x304   :  { %v1885_v1 = vpop.f32.mrf.mxu2  ;;  %v1934_v62 = vpop.f32.mrf.mxu3 }
 0x305   :  { %v1886_v56 = vadd.f32 %v1885_v1, %v1837_v13  ;;  %v1789_v63 = vpop.f32.mrf.mxu0  ;;  %v1838_v4 = vpop.f32.mrf.mxu1 }
 0x306   :  { %v1790_v10 = vadd.f32 %v3748_v46, %v1789_v63 }
 0x307   :  { %v1935_v40 = vadd.f32 %v1934_v62, %v1886_v56 }
 0x308   :  { %v1839_v41 = vadd.f32 %v1838_v4, %v1790_v10 }
 0x309   :  { %1962 = vst [vmem:[#allocation11 + $0x40] sm:$0xff] %v1935_v40 }
 0x30c   :  { %v1887_v53 = vpop.f32.mrf.mxu2  ;;  %v1936_v47 = vpop.f32.mrf.mxu3 }
 0x30d   :  { %v1888_v16 = vadd.f32 %v1887_v53, %v1839_v41  ;;  %v1792_v23 = vpop.f32.mrf.mxu0  ;;  %v1841_v26 = vpop.f32.mrf.mxu1 }
 0x30e   :  { %v1793_v30 = vadd.f32 %v3748_v46, %v1792_v23 }
 0x30f   :  { %v1937_v57 = vadd.f32 %v1936_v47, %v1888_v16 }
 0x310   :  { %v1842_v2 = vadd.f32 %v1841_v26, %v1793_v30 }
 0x311   :  { %1963 = vst [vmem:[#allocation11 + $0x48] sm:$0xff] %v1937_v57 }
 0x314   :  { %v1890_v18 = vpop.f32.mrf.mxu2  ;;  %v1939_v32 = vpop.f32.mrf.mxu3 }
 0x315   :  { %v1891_v45 = vadd.f32 %v1890_v18, %v1842_v2  ;;  %v1794_v33 = vpop.f32.mrf.mxu0  ;;  %v1843_v59 = vpop.f32.mrf.mxu1 }
 0x316   :  { %v1795_v20 = vadd.f32 %v3748_v46, %v1794_v33 }
 0x317   :  { %v1940_v24 = vadd.f32 %v1939_v32, %v1891_v45 }
 0x318   :  { %v1844_v60 = vadd.f32 %v1843_v59, %v1795_v20 }
 0x319   :  { %1964 = vst [vmem:[#allocation11 + $0x50] sm:$0xff] %v1940_v24 }
 0x31c   :  { %v1892_v21 = vpop.f32.mrf.mxu2  ;;  %v1941_v55 = vpop.f32.mrf.mxu3 }
 0x31d   :  { %v1893_v0 = vadd.f32 %v1892_v21, %v1844_v60  ;;  %v1797_v39 = vpop.f32.mrf.mxu0  ;;  %v1846_v44 = vpop.f32.mrf.mxu1 }
 0x31e   :  { %v1798_v42 = vadd.f32 %v3748_v46, %v1797_v39 }
 0x31f   :  { %v1942_v52 = vadd.f32 %v1941_v55, %v1893_v0 }
 0x320   :  { %v1847_v43 = vadd.f32 %v1846_v44, %v1798_v42 }
 0x321   :  { %1965 = vst [vmem:[#allocation11 + $0x58] sm:$0xff] %v1942_v52 }
 0x324   :  { %v1895_v38 = vpop.f32.mrf.mxu2  ;;  %v1944_v11 = vpop.f32.mrf.mxu3 }
 0x325   :  { %v1896_v54 = vadd.f32 %v1895_v38, %v1847_v43  ;;  %v1799_v51 = vpop.f32.mrf.mxu0  ;;  %v1848_v34 = vpop.f32.mrf.mxu1 }
 0x326   :  { %v1800_v31 = vadd.f32 %v3748_v46, %v1799_v51 }
 0x327   :  { %v1945_v8 = vadd.f32 %v1944_v11, %v1896_v54 }
 0x328   :  { %v1849_v61 = vadd.f32 %v1848_v34, %v1800_v31 }
 0x329   :  { %1966 = vst [vmem:[#allocation11 + $0x60] sm:$0xff] %v1945_v8 }
 0x32c   :  { %v1897_v3 = vpop.f32.mrf.mxu2  ;;  %v1946_v48 = vpop.f32.mrf.mxu3 }
 0x32d   :  { %v1898_v14 = vadd.f32 %v1897_v3, %v1849_v61 }
 0x32f   :  { %v1947_v37 = vadd.f32 %v1946_v48, %v1898_v14 }
 0x331   :  { %1967 = vst [vmem:[#allocation11 + $0x68] sm:$0xff] %v1947_v37 }
 0x34f   :  { %v1802_v6 = vpop.f32.mrf.mxu0 }
 0x350   :  { %v1803_v19 = vadd.f32 %v3748_v46, %v1802_v6  ;;  %v1851_v25 = vpop.f32.mrf.mxu1 }
 0x352   :  { %v1852_v27 = vadd.f32 %v1851_v25, %v1803_v19 }
 0x357   :  { %v1804_v58 = vpop.f32.mrf.mxu0 }
 0x358   :  { %v1805_v17 = vadd.f32 %v3748_v46, %v1804_v58  ;;  %v1853_v49 = vpop.f32.mrf.mxu1 }
 0x35a   :  { %v1854_v12 = vadd.f32 %v1853_v49, %v1805_v17 }
 0x35b   :  { %v1900_v22 = vpop.f32.mrf.mxu2 }
 0x35c   :  { %v1901_v28 = vadd.f32 %v1900_v22, %v1852_v27  ;;  %v1949_v9 = vpop.f32.mrf.mxu3 }
 0x35e   :  { %v1950_v5 = vadd.f32 %v1949_v9, %v1901_v28 }
 0x360   :  { %1968 = vst [vmem:[#allocation11 + $0x70] sm:$0xff] %v1950_v5 }
 0x363   :  { %v1902_v7 = vpop.f32.mrf.mxu2 }
 0x364   :  { %v1903_v35 = vadd.f32 %v1902_v7, %v1854_v12  ;;  %v1951_v15 = vpop.f32.mrf.mxu3 }
 0x366   :  { %v1952_v50 = vadd.f32 %v1951_v15, %v1903_v35 }
 0x368   :  { %1969 = vst [vmem:[#allocation11 + $0x78] sm:$0xff] %v1952_v50 }
 0x369   :  { %1982 = dma.vmem_to_hbm [thread:$0]  %s1975_s9, 2048, %s1977_s12, [#allocation4], %s2646_s18, %s2646_s18, %s2647_s4  }
 0x36a   :  { %2641 = dma.done.wait [#allocation4], 2048  }
 0x36b   :  { %2642 = vsyncadd [#allocation4], 4294965248 }
 0x36c   :  { %1987 = vsyncpa [#allocation3], 1 }
 0x36d   :  { %1988 = vsyncpa [#allocation6], 1 }
 0x36e   :  { %1989 = vsyncpa [#allocation9], 1 }
 0x36f   :  { %1990 = vsyncpa [#allocation4], 1 }

</bundles_post_ra>
